<compile_context>
chip_gen: v7x
topology: tpu7x:2x2x1
jax: 0.10.0
libtpu: 0.0.40
codegen_flags: <defaults>
</compile_context>

<pallas_src>
import functools

import numpy as np
import jax
import jax.numpy as jnp
from jax import lax
from jax.experimental import pallas as pl
from jax.experimental.pallas import tpu as pltpu


def _mm(a, b):
    """a @ b, f32 accumulation, DEFAULT precision (single-pass bf16 MXU)."""
    return lax.dot_general(a, b, (((1,), (0,)), ((), ())),
                           preferred_element_type=jnp.float32)


def _mm_t(a, b):
    """a @ b.T (contract last dims), f32 accumulation, DEFAULT precision."""
    return lax.dot_general(a, b, (((1,), (1,)), ((), ())),
                           preferred_element_type=jnp.float32)


def decoder_kernel(x_ref, enc_ref,
                   s_wq, s_bq, s_wk, s_bk, s_wvo, s_bvo, s_ob,   # self-attn
                   c_wq, c_bq, c_wk, c_bk, c_wvo, c_bvo, c_ob,   # cross-attn
                   g_ref, b_ref,                                  # shared LayerNorm
                   w1_ref, b1_ref, w2_ref, b2_ref,                # feed-forward
                   o_ref, attn_scr, *, num_heads, nb):
    L = x_ref.shape[1]
    S = enc_ref.shape[1]
    E = x_ref.shape[2]
    hd = E // num_heads

    # Flatten the (possibly folded) batch for all token-wise matmuls.
    xf = x_ref[...].reshape(nb * L, E)        # (nb*L, E)
    encf = enc_ref[...].reshape(nb * S, E)    # (nb*S, E)

    # Hoist LayerNorm params once (shared instance, used 3x).
    gam = g_ref[...]                          # (1, E)
    bet = b_ref[...]                          # (1, E)

    def layer_norm(z):
        mu = jnp.mean(z, axis=-1, keepdims=True)
        var = jnp.mean(jnp.square(z - mu), axis=-1, keepdims=True)
        return (z - mu) * lax.rsqrt(var + 1e-5) * gam + bet

    def mha(q_in, kv_in, kv_len, wq, bq, wk, bk, wvo, bvo, ob_ref):
        # Packed projections: 3 matmuls total (was 3*H per-head matmuls).
        #   q : (nb*L, E)     -- softmax 1/sqrt(hd) pre-folded into wq / bq
        #   k : (nb*S, E)
        #   vo: (nb*S, H*E)   -- per-head Wv_h @ Wo_h pre-folded host-side,
        #                        lane-dense (H*E == 128 lanes at E=32, H=4)
        q = _mm(q_in, wq[...]) + bq[...]
        k = _mm(kv_in, wk[...]) + bk[...]
        vo = _mm(kv_in, wvo[...]) + bvo[...]
        ob = ob_ref[...]                      # (1, E) out_proj bias

        # Per-head lane slices (8- / 32-lane aligned windows; cheap selects).
        qh = [q[:, h * hd:(h + 1) * hd] for h in range(num_heads)]
        kh = [k[:, h * hd:(h + 1) * hd] for h in range(num_heads)]
        voh = [vo[:, h * E:(h + 1) * E] for h in range(num_heads)]

        outs = []
        for n in range(nb):                   # static unroll (nb is 1 or N)
            acc = jnp.zeros((L, E), jnp.float32)
            for h in range(num_heads):
                qn = qh[h][n * L:(n + 1) * L]                 # sublane-aligned
                kn = kh[h][n * kv_len:(n + 1) * kv_len]
                s = _mm_t(qn, kn)                             # (L, kv_len), pre-scaled
                s = s - jnp.max(s, axis=-1, keepdims=True)
                p = jnp.exp(s)
                p = p * pl.reciprocal(jnp.sum(p, axis=-1, keepdims=True),
                                      approx=True)
                # Head output folded straight into the output projection
                # (Wv_h @ Wo_h pre-multiplied); no concat of heads.
                acc = acc + _mm(p, voh[h][n * kv_len:(n + 1) * kv_len])
            outs.append(acc + ob)
        if nb == 1:
            return outs[0]
        # nb > 1: no jnp.concatenate — write per-n tiles with sublane-aligned
        # stores into the VMEM accumulator and read back flat.
        for n in range(nb):
            attn_scr[pl.ds(n * L, L), :] = outs[n]
        return attn_scr[...]

    # self-attention + add & norm
    a1 = mha(xf, xf, L, s_wq, s_bq, s_wk, s_bk, s_wvo, s_bvo, s_ob)
    x1 = layer_norm(xf + a1)
    # encoder (cross) attention + add & norm
    a2 = mha(x1, encf, S, c_wq, c_bq, c_wk, c_bk, c_wvo, c_bvo, c_ob)
    x2 = layer_norm(x1 + a2)
    # feed-forward (Linear -> ReLU -> Linear), dropout == identity (eval)
    h1 = jnp.maximum(_mm(x2, w1_ref[...]) + b1_ref[...], 0.0)
    ff = _mm(h1, w2_ref[...]) + b2_ref[...]
    res = layer_norm(x2 + ff)

    for n in range(nb):                       # sublane-aligned row stores
        o_ref[n] = res[n * L:(n + 1) * L]


def _prep_params(params, H):
    """Host-side re-layout of the PyTorch-style parameters.

    Per attention instance:
      * Wq (E,E) in->out with the 1/sqrt(hd) softmax scale folded in (+ bq).
      * Wk (E,E) in->out (+ bk).
      * Wvo (E, H*E): head-block h is Wv_h @ Wo_h; bvo (1, H*E) is b_v_h @ Wo_h
        (folds held exactly on the value rows — no softmax-sum assumption).
    FFN weights are pre-transposed to (in, out) layout.
    """
    PH = lax.Precision.HIGHEST

    def prep_attn(iw, ib, ow, ob):
        E = iw.shape[1]
        hd = E // H
        scale = 1.0 / np.sqrt(hd)
        wq = iw[:E].T * scale                 # (E, E), scale folded
        bq = ib[:, :E] * scale                # (1, E)
        wk = iw[E:2 * E].T                    # (E, E)
        bk = ib[:, E:2 * E]                   # (1, E)
        wv = iw[2 * E:].T                     # (E, E); head h = cols h*hd:(h+1)*hd
        bv = ib[:, 2 * E:]                    # (1, E)
        wo = ow.T                             # (E, E) in->out; head h = rows h*hd:(h+1)*hd
        wvo = jnp.concatenate(
            [jnp.matmul(wv[:, h * hd:(h + 1) * hd],
                        wo[h * hd:(h + 1) * hd], precision=PH)
             for h in range(H)], axis=1)      # (E, H*E)
        bvo = jnp.concatenate(
            [jnp.matmul(bv[:, h * hd:(h + 1) * hd],
                        wo[h * hd:(h + 1) * hd], precision=PH)
             for h in range(H)], axis=1)      # (1, H*E)
        return [wq, bq, wk, bk, wvo, bvo, ob]

    plist = []
    plist += prep_attn(params["siw"], params["sib"], params["sow"], params["sob"])
    plist += prep_attn(params["ciw"], params["cib"], params["cow"], params["cob"])
    plist += [params["ln_g"], params["ln_b"],
              params["w1"].T, params["b1"],   # FFN weights pre-transposed
              params["w2"].T, params["b2"]]   # to (in, out) layout
    return plist


def _num_tensorcores():
    """TensorCores per device: structured query first, device_kind fallback."""
    try:
        dev = jax.devices()[0]
        if dev.platform != "tpu":
            return 1
    except Exception:
        return 1
    # Structured query (attribute names restricted to unambiguous TC counts).
    try:
        info = pltpu.get_tpu_info()
        for attr in ("num_tensorcores", "tensorcore_count",
                     "tensorcores_per_chip", "num_cores_per_chip"):
            n = getattr(info, attr, None)
            if isinstance(n, int) and 1 <= n <= 8:
                return n
    except Exception:
        pass
    kind = dev.device_kind.lower()
    if any(t in kind for t in ("v2", "v3", "lite", "v5e", "v6e")):
        return 1
    if any(t in kind for t in ("v4", "v5p", "v7", "7x")):
        return 2
    return 1


def decoder_forward(x, enc_out, params, num_heads):
    N, L, E = x.shape
    S = enc_out.shape[1]
    H = num_heads
    plist = _prep_params(params, H)

    def build(nb, dim_sem):
        grid = (N // nb,)

        def full_spec(arr):
            nd = arr.ndim
            return pl.BlockSpec(arr.shape, lambda n, _nd=nd: (0,) * _nd)

        kernel = functools.partial(decoder_kernel, num_heads=H, nb=nb)
        return pl.pallas_call(
            kernel,
            out_shape=jax.ShapeDtypeStruct((N, L, E), jnp.float32),
            grid=grid,
            in_specs=[pl.BlockSpec((nb, L, E), lambda n: (n, 0, 0)),
                      pl.BlockSpec((nb, S, E), lambda n: (n, 0, 0))]
                     + [full_spec(p) for p in plist],
            out_specs=pl.BlockSpec((nb, L, E), lambda n: (n, 0, 0)),
            scratch_shapes=[pltpu.VMEM((nb * L, E), jnp.float32)],
            compiler_params=pltpu.CompilerParams(dimension_semantics=dim_sem),
        )

    ncores = _num_tensorcores()
    if ncores > 1 and N % ncores == 0:
        # Multi-TensorCore chips (v4/v5p megacore, v7x): pin the batch grid
        # axis to the cores explicitly — only CORE_PARALLEL changes codegen —
        # keeping nb = N // ncores batch elements per grid step per core.
        try:
            out = build(N // ncores, (pltpu.CORE_PARALLEL,))(x, enc_out, *plist)
            return jax.block_until_ready(out)
        except Exception:
            pass  # conservative fallback: folded single-core schedule below
    # Single-TC chips (v5e/v6e): fold the whole batch into ONE grid step so
    # projections / FFN run on flattened (N*L, E) activations (max sublane
    # fill, single grid-step overhead).
    return build(N, ("arbitrary",))(x, enc_out, *plist)


def reference(x, enc, p, H):
    """Pure-JAX reference (HIGHEST precision) matching PyTorch eval semantics."""
    PH = lax.Precision.HIGHEST

    def ln(z):
        mu = z.mean(-1, keepdims=True)
        var = ((z - mu) ** 2).mean(-1, keepdims=True)
        return (z - mu) / jnp.sqrt(var + 1e-5) * p["ln_g"][0] + p["ln_b"][0]

    def mha(q_in, kv_in, iw, ib, ow, ob):
        E = q_in.shape[-1]
        hd = E // H
        q = jnp.matmul(q_in, iw[:E].T, precision=PH) + ib[0, :E]
        k = jnp.matmul(kv_in, iw[E:2 * E].T, precision=PH) + ib[0, E:2 * E]
        v = jnp.matmul(kv_in, iw[2 * E:].T, precision=PH) + ib[0, 2 * E:]

        def split(t):
            return t.reshape(t.shape[0], t.shape[1], H, hd).transpose(0, 2, 1, 3)

        qh, kh, vh = split(q), split(k), split(v)
        s = jnp.einsum("nhld,nhsd->nhls", qh, kh, precision=PH) / np.sqrt(hd)
        pa = jax.nn.softmax(s, axis=-1)
        o = jnp.einsum("nhls,nhsd->nhld", pa, vh, precision=PH)
        o = o.transpose(0, 2, 1, 3).reshape(q_in.shape)
        return jnp.matmul(o, ow.T, precision=PH) + ob[0]

    x1 = ln(x + mha(x, x, p["siw"], p["sib"], p["sow"], p["sob"]))
    x2 = ln(x1 + mha(x1, enc, p["ciw"], p["cib"], p["cow"], p["cob"]))
    h1 = jnp.maximum(jnp.matmul(x2, p["w1"].T, precision=PH) + p["b1"][0], 0.0)
    ff = jnp.matmul(h1, p["w2"].T, precision=PH) + p["b2"][0]
    return ln(x2 + ff)


if __name__ == "__main__":
    N, L, S, E, H = 2, 8, 8, 32, 4   # batch, tgt seq, src seq, embed, heads

    key = jax.random.PRNGKey(0)
    keys = jax.random.split(key, 20)

    def rnd(k, shape, scale=0.1):
        return (scale * jax.random.normal(k, shape)).astype(jnp.float32)

    params = {
        # self-attention: packed in_proj (3E, E) / (1, 3E), out_proj (E, E)
        "siw": rnd(keys[0], (3 * E, E)),
        "sib": rnd(keys[1], (1, 3 * E)),
        "sow": rnd(keys[2], (E, E)),
        "sob": rnd(keys[3], (1, E)),
        # cross-attention
        "ciw": rnd(keys[4], (3 * E, E)),
        "cib": rnd(keys[5], (1, 3 * E)),
        "cow": rnd(keys[6], (E, E)),
        "cob": rnd(keys[7], (1, E)),
        # shared LayerNorm (same instance used 3x in the PyTorch module)
        "ln_g": jnp.ones((1, E), jnp.float32),
        "ln_b": jnp.zeros((1, E), jnp.float32),
        # feed-forward
        "w1": rnd(keys[8], (4 * E, E)),
        "b1": rnd(keys[9], (1, 4 * E)),
        "w2": rnd(keys[10], (E, 4 * E)),
        "b2": rnd(keys[11], (1, E)),
    }

    x = rnd(keys[12], (N, L, E), scale=1.0)
    enc_out = rnd(keys[13], (N, S, E), scale=1.0)

    out = decoder_forward(x, enc_out, params, num_heads=H)
    out = jax.block_until_ready(out)

    ref = jax.block_until_ready(reference(x, enc_out, params, H))
    assert out.shape == (N, L, E)
    # Tolerance relaxed vs. the HIGHEST-precision reference because the kernel
    # intentionally uses single-pass bf16 MXU matmuls (DEFAULT precision), an
    # approximate EUP reciprocal in the softmax, and host-folded Wv@Wo weights.
    np.testing.assert_allclose(np.asarray(out), np.asarray(ref),
                               rtol=2e-2, atol=2e-2)
    print("KERNEL_OK")
</pallas_src>

<mosaic_0001>
module attributes {stable_mosaic.version = 11 : i64} {
  func.func @decoder_kernel(%arg0: i32, %arg1: memref<2x8x32xf32, #tpu.memory_space<vmem>>, %arg2: memref<2x8x32xf32, #tpu.memory_space<vmem>>, %arg3: memref<32x32xf32, #tpu.memory_space<vmem>>, %arg4: memref<1x32xf32, #tpu.memory_space<vmem>>, %arg5: memref<32x32xf32, #tpu.memory_space<vmem>>, %arg6: memref<1x32xf32, #tpu.memory_space<vmem>>, %arg7: memref<32x128xf32, #tpu.memory_space<vmem>>, %arg8: memref<1x128xf32, #tpu.memory_space<vmem>>, %arg9: memref<1x32xf32, #tpu.memory_space<vmem>>, %arg10: memref<32x32xf32, #tpu.memory_space<vmem>>, %arg11: memref<1x32xf32, #tpu.memory_space<vmem>>, %arg12: memref<32x32xf32, #tpu.memory_space<vmem>>, %arg13: memref<1x32xf32, #tpu.memory_space<vmem>>, %arg14: memref<32x128xf32, #tpu.memory_space<vmem>>, %arg15: memref<1x128xf32, #tpu.memory_space<vmem>>, %arg16: memref<1x32xf32, #tpu.memory_space<vmem>>, %arg17: memref<1x32xf32, #tpu.memory_space<vmem>>, %arg18: memref<1x32xf32, #tpu.memory_space<vmem>>, %arg19: memref<32x128xf32, #tpu.memory_space<vmem>>, %arg20: memref<1x128xf32, #tpu.memory_space<vmem>>, %arg21: memref<128x32xf32, #tpu.memory_space<vmem>>, %arg22: memref<1x32xf32, #tpu.memory_space<vmem>>, %arg23: memref<2x8x32xf32, #tpu.memory_space<vmem>>, %arg24: memref<16x32xf32, #tpu.memory_space<vmem>>) attributes {dimension_semantics = [#tpu.dimension_semantics<arbitrary>], iteration_bounds = array<i64: 1>, scalar_prefetch = 0 : i64, scratch_operands = 1 : i64, tpu.core_type = #tpu.core_type<tc>, window_params = [{transform_indices = @transform_0, window_bounds = array<i64: 2, 8, 32>}, {transform_indices = @transform_1, window_bounds = array<i64: 2, 8, 32>}, {pipeline_mode = #tpu.pipeline_mode<synchronous>, transform_indices = @transform_2, window_bounds = array<i64: 32, 32>}, {pipeline_mode = #tpu.pipeline_mode<synchronous>, transform_indices = @transform_3, window_bounds = array<i64: 1, 32>}, {pipeline_mode = #tpu.pipeline_mode<synchronous>, transform_indices = @transform_4, window_bounds = array<i64: 32, 32>}, {pipeline_mode = #tpu.pipeline_mode<synchronous>, transform_indices = @transform_5, window_bounds = array<i64: 1, 32>}, {pipeline_mode = #tpu.pipeline_mode<synchronous>, transform_indices = @transform_6, window_bounds = array<i64: 32, 128>}, {pipeline_mode = #tpu.pipeline_mode<synchronous>, transform_indices = @transform_7, window_bounds = array<i64: 1, 128>}, {pipeline_mode = #tpu.pipeline_mode<synchronous>, transform_indices = @transform_8, window_bounds = array<i64: 1, 32>}, {pipeline_mode = #tpu.pipeline_mode<synchronous>, transform_indices = @transform_9, window_bounds = array<i64: 32, 32>}, {pipeline_mode = #tpu.pipeline_mode<synchronous>, transform_indices = @transform_10, window_bounds = array<i64: 1, 32>}, {pipeline_mode = #tpu.pipeline_mode<synchronous>, transform_indices = @transform_11, window_bounds = array<i64: 32, 32>}, {pipeline_mode = #tpu.pipeline_mode<synchronous>, transform_indices = @transform_12, window_bounds = array<i64: 1, 32>}, {pipeline_mode = #tpu.pipeline_mode<synchronous>, transform_indices = @transform_13, window_bounds = array<i64: 32, 128>}, {pipeline_mode = #tpu.pipeline_mode<synchronous>, transform_indices = @transform_14, window_bounds = array<i64: 1, 128>}, {pipeline_mode = #tpu.pipeline_mode<synchronous>, transform_indices = @transform_15, window_bounds = array<i64: 1, 32>}, {pipeline_mode = #tpu.pipeline_mode<synchronous>, transform_indices = @transform_16, window_bounds = array<i64: 1, 32>}, {pipeline_mode = #tpu.pipeline_mode<synchronous>, transform_indices = @transform_17, window_bounds = array<i64: 1, 32>}, {pipeline_mode = #tpu.pipeline_mode<synchronous>, transform_indices = @transform_18, window_bounds = array<i64: 32, 128>}, {pipeline_mode = #tpu.pipeline_mode<synchronous>, transform_indices = @transform_19, window_bounds = array<i64: 1, 128>}, {pipeline_mode = #tpu.pipeline_mode<synchronous>, transform_indices = @transform_20, window_bounds = array<i64: 128, 32>}, {pipeline_mode = #tpu.pipeline_mode<synchronous>, transform_indices = @transform_21, window_bounds = array<i64: 1, 32>}, {transform_indices = @transform_22, window_bounds = array<i64: 2, 8, 32>}]} {
    %c0 = arith.constant 0 : index
    %c0_0 = arith.constant 0 : index
    %c0_1 = arith.constant 0 : index
    %0 = vector.load %arg1[%c0, %c0_0, %c0_1] : memref<2x8x32xf32, #tpu.memory_space<vmem>>, vector<2x8x32xf32>
    %1 = vector.shape_cast %0 : vector<2x8x32xf32> to vector<16x32xf32>
    %c0_2 = arith.constant 0 : index
    %c0_3 = arith.constant 0 : index
    %c0_4 = arith.constant 0 : index
    %2 = vector.load %arg2[%c0_2, %c0_3, %c0_4] : memref<2x8x32xf32, #tpu.memory_space<vmem>>, vector<2x8x32xf32>
    %3 = vector.shape_cast %2 : vector<2x8x32xf32> to vector<16x32xf32>
    %c0_5 = arith.constant 0 : index
    %c0_6 = arith.constant 0 : index
    %4 = vector.load %arg17[%c0_5, %c0_6] : memref<1x32xf32, #tpu.memory_space<vmem>>, vector<1x32xf32>
    %c0_7 = arith.constant 0 : index
    %c0_8 = arith.constant 0 : index
    %5 = vector.load %arg18[%c0_7, %c0_8] : memref<1x32xf32, #tpu.memory_space<vmem>>, vector<1x32xf32>
    %c0_9 = arith.constant 0 : index
    %c0_10 = arith.constant 0 : index
    %6 = vector.load %arg3[%c0_9, %c0_10] : memref<32x32xf32, #tpu.memory_space<vmem>>, vector<32x32xf32>
    %cst = arith.constant dense<0.000000e+00> : vector<16x32xf32>
    %7 = tpu.matmul %1, %6, %cst {dimension_numbers = #tpu.dot_dimension_numbers<[1], [0], [0], [1], [0, 0, 1, 1], [], []>} : vector<16x32xf32>, vector<32x32xf32>, vector<16x32xf32> -> vector<16x32xf32>
    %c0_11 = arith.constant 0 : index
    %c0_12 = arith.constant 0 : index
    %8 = vector.load %arg4[%c0_11, %c0_12] : memref<1x32xf32, #tpu.memory_space<vmem>>, vector<1x32xf32>
    %9 = vector.broadcast %8 : vector<1x32xf32> to vector<16x32xf32>
    %10 = arith.addf %7, %9 : vector<16x32xf32>
    %c0_13 = arith.constant 0 : index
    %c0_14 = arith.constant 0 : index
    %11 = vector.load %arg5[%c0_13, %c0_14] : memref<32x32xf32, #tpu.memory_space<vmem>>, vector<32x32xf32>
    %cst_15 = arith.constant dense<0.000000e+00> : vector<16x32xf32>
    %12 = tpu.matmul %1, %11, %cst_15 {dimension_numbers = #tpu.dot_dimension_numbers<[1], [0], [0], [1], [0, 0, 1, 1], [], []>} : vector<16x32xf32>, vector<32x32xf32>, vector<16x32xf32> -> vector<16x32xf32>
    %c0_16 = arith.constant 0 : index
    %c0_17 = arith.constant 0 : index
    %13 = vector.load %arg6[%c0_16, %c0_17] : memref<1x32xf32, #tpu.memory_space<vmem>>, vector<1x32xf32>
    %14 = vector.broadcast %13 : vector<1x32xf32> to vector<16x32xf32>
    %15 = arith.addf %12, %14 : vector<16x32xf32>
    %c0_18 = arith.constant 0 : index
    %c0_19 = arith.constant 0 : index
    %16 = vector.load %arg7[%c0_18, %c0_19] : memref<32x128xf32, #tpu.memory_space<vmem>>, vector<32x128xf32>
    %cst_20 = arith.constant dense<0.000000e+00> : vector<16x128xf32>
    %17 = tpu.matmul %1, %16, %cst_20 {dimension_numbers = #tpu.dot_dimension_numbers<[1], [0], [0], [1], [0, 0, 1, 1], [], []>} : vector<16x32xf32>, vector<32x128xf32>, vector<16x128xf32> -> vector<16x128xf32>
    %c0_21 = arith.constant 0 : index
    %c0_22 = arith.constant 0 : index
    %18 = vector.load %arg8[%c0_21, %c0_22] : memref<1x128xf32, #tpu.memory_space<vmem>>, vector<1x128xf32>
    %19 = vector.broadcast %18 : vector<1x128xf32> to vector<16x128xf32>
    %20 = arith.addf %17, %19 : vector<16x128xf32>
    %c0_23 = arith.constant 0 : index
    %c0_24 = arith.constant 0 : index
    %21 = vector.load %arg9[%c0_23, %c0_24] : memref<1x32xf32, #tpu.memory_space<vmem>>, vector<1x32xf32>
    %22 = vector.extract_strided_slice %10 {offsets = [0, 0], sizes = [16, 8], strides = [1, 1]} : vector<16x32xf32> to vector<16x8xf32>
    %23 = vector.extract_strided_slice %10 {offsets = [0, 8], sizes = [16, 8], strides = [1, 1]} : vector<16x32xf32> to vector<16x8xf32>
    %24 = vector.extract_strided_slice %10 {offsets = [0, 16], sizes = [16, 8], strides = [1, 1]} : vector<16x32xf32> to vector<16x8xf32>
    %25 = vector.extract_strided_slice %10 {offsets = [0, 24], sizes = [16, 8], strides = [1, 1]} : vector<16x32xf32> to vector<16x8xf32>
    %26 = vector.extract_strided_slice %15 {offsets = [0, 0], sizes = [16, 8], strides = [1, 1]} : vector<16x32xf32> to vector<16x8xf32>
    %27 = vector.extract_strided_slice %15 {offsets = [0, 8], sizes = [16, 8], strides = [1, 1]} : vector<16x32xf32> to vector<16x8xf32>
    %28 = vector.extract_strided_slice %15 {offsets = [0, 16], sizes = [16, 8], strides = [1, 1]} : vector<16x32xf32> to vector<16x8xf32>
    %29 = vector.extract_strided_slice %15 {offsets = [0, 24], sizes = [16, 8], strides = [1, 1]} : vector<16x32xf32> to vector<16x8xf32>
    %30 = vector.extract_strided_slice %20 {offsets = [0, 0], sizes = [16, 32], strides = [1, 1]} : vector<16x128xf32> to vector<16x32xf32>
    %31 = vector.extract_strided_slice %20 {offsets = [0, 32], sizes = [16, 32], strides = [1, 1]} : vector<16x128xf32> to vector<16x32xf32>
    %32 = vector.extract_strided_slice %20 {offsets = [0, 64], sizes = [16, 32], strides = [1, 1]} : vector<16x128xf32> to vector<16x32xf32>
    %33 = vector.extract_strided_slice %20 {offsets = [0, 96], sizes = [16, 32], strides = [1, 1]} : vector<16x128xf32> to vector<16x32xf32>
    %cst_25 = arith.constant 0.000000e+00 : f32
    %34 = vector.broadcast %cst_25 : f32 to vector<8x32xf32>
    %35 = vector.extract_strided_slice %22 {offsets = [0, 0], sizes = [8, 8], strides = [1, 1]} : vector<16x8xf32> to vector<8x8xf32>
    %36 = vector.extract_strided_slice %26 {offsets = [0, 0], sizes = [8, 8], strides = [1, 1]} : vector<16x8xf32> to vector<8x8xf32>
    %cst_26 = arith.constant dense<0.000000e+00> : vector<8x8xf32>
    %37 = tpu.matmul %35, %36, %cst_26 {dimension_numbers = #tpu.dot_dimension_numbers<[1], [1], [0], [0], [0, 0, 1, 0], [], []>} : vector<8x8xf32>, vector<8x8xf32>, vector<8x8xf32> -> vector<8x8xf32>
    %cst_27 = arith.constant dense<0xFF800000> : vector<8xf32>
    %38 = vector.multi_reduction <maximumf>, %37, %cst_27 [1] : vector<8x8xf32> to vector<8xf32>
    %39 = vector.shape_cast %38 : vector<8xf32> to vector<8x1xf32>
    %40 = vector.broadcast %39 : vector<8x1xf32> to vector<8x8xf32>
    %41 = arith.subf %37, %40 : vector<8x8xf32>
    %42 = math.exp %41 : vector<8x8xf32>
    %cst_28 = arith.constant dense<0.000000e+00> : vector<8xf32>
    %43 = vector.multi_reduction <add>, %42, %cst_28 [1] : vector<8x8xf32> to vector<8xf32>
    %44 = vector.shape_cast %43 : vector<8xf32> to vector<8x1xf32>
    %45 = tpu.reciprocal %44 {approx = true} : vector<8x1xf32> -> vector<8x1xf32>
    %46 = vector.broadcast %45 : vector<8x1xf32> to vector<8x8xf32>
    %47 = arith.mulf %42, %46 : vector<8x8xf32>
    %48 = vector.extract_strided_slice %30 {offsets = [0, 0], sizes = [8, 32], strides = [1, 1]} : vector<16x32xf32> to vector<8x32xf32>
    %cst_29 = arith.constant dense<0.000000e+00> : vector<8x32xf32>
    %49 = tpu.matmul %47, %48, %cst_29 {dimension_numbers = #tpu.dot_dimension_numbers<[1], [0], [0], [1], [0, 0, 1, 1], [], []>} : vector<8x8xf32>, vector<8x32xf32>, vector<8x32xf32> -> vector<8x32xf32>
    %50 = arith.addf %34, %49 : vector<8x32xf32>
    %51 = vector.extract_strided_slice %23 {offsets = [0, 0], sizes = [8, 8], strides = [1, 1]} : vector<16x8xf32> to vector<8x8xf32>
    %52 = vector.extract_strided_slice %27 {offsets = [0, 0], sizes = [8, 8], strides = [1, 1]} : vector<16x8xf32> to vector<8x8xf32>
    %cst_30 = arith.constant dense<0.000000e+00> : vector<8x8xf32>
    %53 = tpu.matmul %51, %52, %cst_30 {dimension_numbers = #tpu.dot_dimension_numbers<[1], [1], [0], [0], [0, 0, 1, 0], [], []>} : vector<8x8xf32>, vector<8x8xf32>, vector<8x8xf32> -> vector<8x8xf32>
    %cst_31 = arith.constant dense<0xFF800000> : vector<8xf32>
    %54 = vector.multi_reduction <maximumf>, %53, %cst_31 [1] : vector<8x8xf32> to vector<8xf32>
    %55 = vector.shape_cast %54 : vector<8xf32> to vector<8x1xf32>
    %56 = vector.broadcast %55 : vector<8x1xf32> to vector<8x8xf32>
    %57 = arith.subf %53, %56 : vector<8x8xf32>
    %58 = math.exp %57 : vector<8x8xf32>
    %cst_32 = arith.constant dense<0.000000e+00> : vector<8xf32>
    %59 = vector.multi_reduction <add>, %58, %cst_32 [1] : vector<8x8xf32> to vector<8xf32>
    %60 = vector.shape_cast %59 : vector<8xf32> to vector<8x1xf32>
    %61 = tpu.reciprocal %60 {approx = true} : vector<8x1xf32> -> vector<8x1xf32>
    %62 = vector.broadcast %61 : vector<8x1xf32> to vector<8x8xf32>
    %63 = arith.mulf %58, %62 : vector<8x8xf32>
    %64 = vector.extract_strided_slice %31 {offsets = [0, 0], sizes = [8, 32], strides = [1, 1]} : vector<16x32xf32> to vector<8x32xf32>
    %cst_33 = arith.constant dense<0.000000e+00> : vector<8x32xf32>
    %65 = tpu.matmul %63, %64, %cst_33 {dimension_numbers = #tpu.dot_dimension_numbers<[1], [0], [0], [1], [0, 0, 1, 1], [], []>} : vector<8x8xf32>, vector<8x32xf32>, vector<8x32xf32> -> vector<8x32xf32>
    %66 = arith.addf %50, %65 : vector<8x32xf32>
    %67 = vector.extract_strided_slice %24 {offsets = [0, 0], sizes = [8, 8], strides = [1, 1]} : vector<16x8xf32> to vector<8x8xf32>
    %68 = vector.extract_strided_slice %28 {offsets = [0, 0], sizes = [8, 8], strides = [1, 1]} : vector<16x8xf32> to vector<8x8xf32>
    %cst_34 = arith.constant dense<0.000000e+00> : vector<8x8xf32>
    %69 = tpu.matmul %67, %68, %cst_34 {dimension_numbers = #tpu.dot_dimension_numbers<[1], [1], [0], [0], [0, 0, 1, 0], [], []>} : vector<8x8xf32>, vector<8x8xf32>, vector<8x8xf32> -> vector<8x8xf32>
    %cst_35 = arith.constant dense<0xFF800000> : vector<8xf32>
    %70 = vector.multi_reduction <maximumf>, %69, %cst_35 [1] : vector<8x8xf32> to vector<8xf32>
    %71 = vector.shape_cast %70 : vector<8xf32> to vector<8x1xf32>
    %72 = vector.broadcast %71 : vector<8x1xf32> to vector<8x8xf32>
    %73 = arith.subf %69, %72 : vector<8x8xf32>
    %74 = math.exp %73 : vector<8x8xf32>
    %cst_36 = arith.constant dense<0.000000e+00> : vector<8xf32>
    %75 = vector.multi_reduction <add>, %74, %cst_36 [1] : vector<8x8xf32> to vector<8xf32>
    %76 = vector.shape_cast %75 : vector<8xf32> to vector<8x1xf32>
    %77 = tpu.reciprocal %76 {approx = true} : vector<8x1xf32> -> vector<8x1xf32>
    %78 = vector.broadcast %77 : vector<8x1xf32> to vector<8x8xf32>
    %79 = arith.mulf %74, %78 : vector<8x8xf32>
    %80 = vector.extract_strided_slice %32 {offsets = [0, 0], sizes = [8, 32], strides = [1, 1]} : vector<16x32xf32> to vector<8x32xf32>
    %cst_37 = arith.constant dense<0.000000e+00> : vector<8x32xf32>
    %81 = tpu.matmul %79, %80, %cst_37 {dimension_numbers = #tpu.dot_dimension_numbers<[1], [0], [0], [1], [0, 0, 1, 1], [], []>} : vector<8x8xf32>, vector<8x32xf32>, vector<8x32xf32> -> vector<8x32xf32>
    %82 = arith.addf %66, %81 : vector<8x32xf32>
    %83 = vector.extract_strided_slice %25 {offsets = [0, 0], sizes = [8, 8], strides = [1, 1]} : vector<16x8xf32> to vector<8x8xf32>
    %84 = vector.extract_strided_slice %29 {offsets = [0, 0], sizes = [8, 8], strides = [1, 1]} : vector<16x8xf32> to vector<8x8xf32>
    %cst_38 = arith.constant dense<0.000000e+00> : vector<8x8xf32>
    %85 = tpu.matmul %83, %84, %cst_38 {dimension_numbers = #tpu.dot_dimension_numbers<[1], [1], [0], [0], [0, 0, 1, 0], [], []>} : vector<8x8xf32>, vector<8x8xf32>, vector<8x8xf32> -> vector<8x8xf32>
    %cst_39 = arith.constant dense<0xFF800000> : vector<8xf32>
    %86 = vector.multi_reduction <maximumf>, %85, %cst_39 [1] : vector<8x8xf32> to vector<8xf32>
    %87 = vector.shape_cast %86 : vector<8xf32> to vector<8x1xf32>
    %88 = vector.broadcast %87 : vector<8x1xf32> to vector<8x8xf32>
    %89 = arith.subf %85, %88 : vector<8x8xf32>
    %90 = math.exp %89 : vector<8x8xf32>
    %cst_40 = arith.constant dense<0.000000e+00> : vector<8xf32>
    %91 = vector.multi_reduction <add>, %90, %cst_40 [1] : vector<8x8xf32> to vector<8xf32>
    %92 = vector.shape_cast %91 : vector<8xf32> to vector<8x1xf32>
    %93 = tpu.reciprocal %92 {approx = true} : vector<8x1xf32> -> vector<8x1xf32>
    %94 = vector.broadcast %93 : vector<8x1xf32> to vector<8x8xf32>
    %95 = arith.mulf %90, %94 : vector<8x8xf32>
    %96 = vector.extract_strided_slice %33 {offsets = [0, 0], sizes = [8, 32], strides = [1, 1]} : vector<16x32xf32> to vector<8x32xf32>
    %cst_41 = arith.constant dense<0.000000e+00> : vector<8x32xf32>
    %97 = tpu.matmul %95, %96, %cst_41 {dimension_numbers = #tpu.dot_dimension_numbers<[1], [0], [0], [1], [0, 0, 1, 1], [], []>} : vector<8x8xf32>, vector<8x32xf32>, vector<8x32xf32> -> vector<8x32xf32>
    %98 = arith.addf %82, %97 : vector<8x32xf32>
    %99 = vector.broadcast %21 : vector<1x32xf32> to vector<8x32xf32>
    %100 = arith.addf %98, %99 : vector<8x32xf32>
    %cst_42 = arith.constant 0.000000e+00 : f32
    %101 = vector.broadcast %cst_42 : f32 to vector<8x32xf32>
    %102 = vector.extract_strided_slice %22 {offsets = [8, 0], sizes = [8, 8], strides = [1, 1]} : vector<16x8xf32> to vector<8x8xf32>
    %103 = vector.extract_strided_slice %26 {offsets = [8, 0], sizes = [8, 8], strides = [1, 1]} : vector<16x8xf32> to vector<8x8xf32>
    %cst_43 = arith.constant dense<0.000000e+00> : vector<8x8xf32>
    %104 = tpu.matmul %102, %103, %cst_43 {dimension_numbers = #tpu.dot_dimension_numbers<[1], [1], [0], [0], [0, 0, 1, 0], [], []>} : vector<8x8xf32>, vector<8x8xf32>, vector<8x8xf32> -> vector<8x8xf32>
    %cst_44 = arith.constant dense<0xFF800000> : vector<8xf32>
    %105 = vector.multi_reduction <maximumf>, %104, %cst_44 [1] : vector<8x8xf32> to vector<8xf32>
    %106 = vector.shape_cast %105 : vector<8xf32> to vector<8x1xf32>
    %107 = vector.broadcast %106 : vector<8x1xf32> to vector<8x8xf32>
    %108 = arith.subf %104, %107 : vector<8x8xf32>
    %109 = math.exp %108 : vector<8x8xf32>
    %cst_45 = arith.constant dense<0.000000e+00> : vector<8xf32>
    %110 = vector.multi_reduction <add>, %109, %cst_45 [1] : vector<8x8xf32> to vector<8xf32>
    %111 = vector.shape_cast %110 : vector<8xf32> to vector<8x1xf32>
    %112 = tpu.reciprocal %111 {approx = true} : vector<8x1xf32> -> vector<8x1xf32>
    %113 = vector.broadcast %112 : vector<8x1xf32> to vector<8x8xf32>
    %114 = arith.mulf %109, %113 : vector<8x8xf32>
    %115 = vector.extract_strided_slice %30 {offsets = [8, 0], sizes = [8, 32], strides = [1, 1]} : vector<16x32xf32> to vector<8x32xf32>
    %cst_46 = arith.constant dense<0.000000e+00> : vector<8x32xf32>
    %116 = tpu.matmul %114, %115, %cst_46 {dimension_numbers = #tpu.dot_dimension_numbers<[1], [0], [0], [1], [0, 0, 1, 1], [], []>} : vector<8x8xf32>, vector<8x32xf32>, vector<8x32xf32> -> vector<8x32xf32>
    %117 = arith.addf %101, %116 : vector<8x32xf32>
    %118 = vector.extract_strided_slice %23 {offsets = [8, 0], sizes = [8, 8], strides = [1, 1]} : vector<16x8xf32> to vector<8x8xf32>
    %119 = vector.extract_strided_slice %27 {offsets = [8, 0], sizes = [8, 8], strides = [1, 1]} : vector<16x8xf32> to vector<8x8xf32>
    %cst_47 = arith.constant dense<0.000000e+00> : vector<8x8xf32>
    %120 = tpu.matmul %118, %119, %cst_47 {dimension_numbers = #tpu.dot_dimension_numbers<[1], [1], [0], [0], [0, 0, 1, 0], [], []>} : vector<8x8xf32>, vector<8x8xf32>, vector<8x8xf32> -> vector<8x8xf32>
    %cst_48 = arith.constant dense<0xFF800000> : vector<8xf32>
    %121 = vector.multi_reduction <maximumf>, %120, %cst_48 [1] : vector<8x8xf32> to vector<8xf32>
    %122 = vector.shape_cast %121 : vector<8xf32> to vector<8x1xf32>
    %123 = vector.broadcast %122 : vector<8x1xf32> to vector<8x8xf32>
    %124 = arith.subf %120, %123 : vector<8x8xf32>
    %125 = math.exp %124 : vector<8x8xf32>
    %cst_49 = arith.constant dense<0.000000e+00> : vector<8xf32>
    %126 = vector.multi_reduction <add>, %125, %cst_49 [1] : vector<8x8xf32> to vector<8xf32>
    %127 = vector.shape_cast %126 : vector<8xf32> to vector<8x1xf32>
    %128 = tpu.reciprocal %127 {approx = true} : vector<8x1xf32> -> vector<8x1xf32>
    %129 = vector.broadcast %128 : vector<8x1xf32> to vector<8x8xf32>
    %130 = arith.mulf %125, %129 : vector<8x8xf32>
    %131 = vector.extract_strided_slice %31 {offsets = [8, 0], sizes = [8, 32], strides = [1, 1]} : vector<16x32xf32> to vector<8x32xf32>
    %cst_50 = arith.constant dense<0.000000e+00> : vector<8x32xf32>
    %132 = tpu.matmul %130, %131, %cst_50 {dimension_numbers = #tpu.dot_dimension_numbers<[1], [0], [0], [1], [0, 0, 1, 1], [], []>} : vector<8x8xf32>, vector<8x32xf32>, vector<8x32xf32> -> vector<8x32xf32>
    %133 = arith.addf %117, %132 : vector<8x32xf32>
    %134 = vector.extract_strided_slice %24 {offsets = [8, 0], sizes = [8, 8], strides = [1, 1]} : vector<16x8xf32> to vector<8x8xf32>
    %135 = vector.extract_strided_slice %28 {offsets = [8, 0], sizes = [8, 8], strides = [1, 1]} : vector<16x8xf32> to vector<8x8xf32>
    %cst_51 = arith.constant dense<0.000000e+00> : vector<8x8xf32>
    %136 = tpu.matmul %134, %135, %cst_51 {dimension_numbers = #tpu.dot_dimension_numbers<[1], [1], [0], [0], [0, 0, 1, 0], [], []>} : vector<8x8xf32>, vector<8x8xf32>, vector<8x8xf32> -> vector<8x8xf32>
    %cst_52 = arith.constant dense<0xFF800000> : vector<8xf32>
    %137 = vector.multi_reduction <maximumf>, %136, %cst_52 [1] : vector<8x8xf32> to vector<8xf32>
    %138 = vector.shape_cast %137 : vector<8xf32> to vector<8x1xf32>
    %139 = vector.broadcast %138 : vector<8x1xf32> to vector<8x8xf32>
    %140 = arith.subf %136, %139 : vector<8x8xf32>
    %141 = math.exp %140 : vector<8x8xf32>
    %cst_53 = arith.constant dense<0.000000e+00> : vector<8xf32>
    %142 = vector.multi_reduction <add>, %141, %cst_53 [1] : vector<8x8xf32> to vector<8xf32>
    %143 = vector.shape_cast %142 : vector<8xf32> to vector<8x1xf32>
    %144 = tpu.reciprocal %143 {approx = true} : vector<8x1xf32> -> vector<8x1xf32>
    %145 = vector.broadcast %144 : vector<8x1xf32> to vector<8x8xf32>
    %146 = arith.mulf %141, %145 : vector<8x8xf32>
    %147 = vector.extract_strided_slice %32 {offsets = [8, 0], sizes = [8, 32], strides = [1, 1]} : vector<16x32xf32> to vector<8x32xf32>
    %cst_54 = arith.constant dense<0.000000e+00> : vector<8x32xf32>
    %148 = tpu.matmul %146, %147, %cst_54 {dimension_numbers = #tpu.dot_dimension_numbers<[1], [0], [0], [1], [0, 0, 1, 1], [], []>} : vector<8x8xf32>, vector<8x32xf32>, vector<8x32xf32> -> vector<8x32xf32>
    %149 = arith.addf %133, %148 : vector<8x32xf32>
    %150 = vector.extract_strided_slice %25 {offsets = [8, 0], sizes = [8, 8], strides = [1, 1]} : vector<16x8xf32> to vector<8x8xf32>
    %151 = vector.extract_strided_slice %29 {offsets = [8, 0], sizes = [8, 8], strides = [1, 1]} : vector<16x8xf32> to vector<8x8xf32>
    %cst_55 = arith.constant dense<0.000000e+00> : vector<8x8xf32>
    %152 = tpu.matmul %150, %151, %cst_55 {dimension_numbers = #tpu.dot_dimension_numbers<[1], [1], [0], [0], [0, 0, 1, 0], [], []>} : vector<8x8xf32>, vector<8x8xf32>, vector<8x8xf32> -> vector<8x8xf32>
    %cst_56 = arith.constant dense<0xFF800000> : vector<8xf32>
    %153 = vector.multi_reduction <maximumf>, %152, %cst_56 [1] : vector<8x8xf32> to vector<8xf32>
    %154 = vector.shape_cast %153 : vector<8xf32> to vector<8x1xf32>
    %155 = vector.broadcast %154 : vector<8x1xf32> to vector<8x8xf32>
    %156 = arith.subf %152, %155 : vector<8x8xf32>
    %157 = math.exp %156 : vector<8x8xf32>
    %cst_57 = arith.constant dense<0.000000e+00> : vector<8xf32>
    %158 = vector.multi_reduction <add>, %157, %cst_57 [1] : vector<8x8xf32> to vector<8xf32>
    %159 = vector.shape_cast %158 : vector<8xf32> to vector<8x1xf32>
    %160 = tpu.reciprocal %159 {approx = true} : vector<8x1xf32> -> vector<8x1xf32>
    %161 = vector.broadcast %160 : vector<8x1xf32> to vector<8x8xf32>
    %162 = arith.mulf %157, %161 : vector<8x8xf32>
    %163 = vector.extract_strided_slice %33 {offsets = [8, 0], sizes = [8, 32], strides = [1, 1]} : vector<16x32xf32> to vector<8x32xf32>
    %cst_58 = arith.constant dense<0.000000e+00> : vector<8x32xf32>
    %164 = tpu.matmul %162, %163, %cst_58 {dimension_numbers = #tpu.dot_dimension_numbers<[1], [0], [0], [1], [0, 0, 1, 1], [], []>} : vector<8x8xf32>, vector<8x32xf32>, vector<8x32xf32> -> vector<8x32xf32>
    %165 = arith.addf %149, %164 : vector<8x32xf32>
    %166 = vector.broadcast %21 : vector<1x32xf32> to vector<8x32xf32>
    %167 = arith.addf %165, %166 : vector<8x32xf32>
    %c0_59 = arith.constant 0 : index
    %c0_60 = arith.constant 0 : index
    %168 = vector.load %arg24[%c0_59, %c0_60] : memref<16x32xf32, #tpu.memory_space<vmem>>, vector<8x32xf32>
    tpu.vector_store %arg24[%c0_59, %c0_60], %100 {strides = array<i32>} : memref<16x32xf32, #tpu.memory_space<vmem>>, vector<8x32xf32>,
    %c8 = arith.constant 8 : index
    %c0_61 = arith.constant 0 : index
    %169 = vector.load %arg24[%c8, %c0_61] : memref<16x32xf32, #tpu.memory_space<vmem>>, vector<8x32xf32>
    tpu.vector_store %arg24[%c8, %c0_61], %167 {strides = array<i32>} : memref<16x32xf32, #tpu.memory_space<vmem>>, vector<8x32xf32>,
    %c0_62 = arith.constant 0 : index
    %c0_63 = arith.constant 0 : index
    %170 = vector.load %arg24[%c0_62, %c0_63] : memref<16x32xf32, #tpu.memory_space<vmem>>, vector<16x32xf32>
    %171 = arith.addf %1, %170 : vector<16x32xf32>
    %cst_64 = arith.constant dense<0.000000e+00> : vector<16xf32>
    %172 = vector.multi_reduction <add>, %171, %cst_64 [1] : vector<16x32xf32> to vector<16xf32>
    %173 = vector.shape_cast %172 : vector<16xf32> to vector<16x1xf32>
    %cst_65 = arith.constant 3.200000e+01 : f32
    %174 = vector.broadcast %cst_65 : f32 to vector<16x1xf32>
    %175 = arith.divf %173, %174 : vector<16x1xf32>
    %176 = vector.broadcast %175 : vector<16x1xf32> to vector<16x32xf32>
    %177 = arith.subf %171, %176 : vector<16x32xf32>
    %178 = arith.mulf %177, %177 : vector<16x32xf32>
    %cst_66 = arith.constant dense<0.000000e+00> : vector<16xf32>
    %179 = vector.multi_reduction <add>, %178, %cst_66 [1] : vector<16x32xf32> to vector<16xf32>
    %180 = vector.shape_cast %179 : vector<16xf32> to vector<16x1xf32>
    %cst_67 = arith.constant 3.200000e+01 : f32
    %181 = vector.broadcast %cst_67 : f32 to vector<16x1xf32>
    %182 = arith.divf %180, %181 : vector<16x1xf32>
    %183 = vector.broadcast %175 : vector<16x1xf32> to vector<16x32xf32>
    %184 = arith.subf %171, %183 : vector<16x32xf32>
    %cst_68 = arith.constant 9.99999974E-6 : f32
    %185 = vector.broadcast %cst_68 : f32 to vector<16x1xf32>
    %186 = arith.addf %182, %185 : vector<16x1xf32>
    %187 = math.rsqrt %186 : vector<16x1xf32>
    %188 = vector.broadcast %187 : vector<16x1xf32> to vector<16x32xf32>
    %189 = arith.mulf %184, %188 : vector<16x32xf32>
    %190 = vector.broadcast %4 : vector<1x32xf32> to vector<16x32xf32>
    %191 = arith.mulf %189, %190 : vector<16x32xf32>
    %192 = vector.broadcast %5 : vector<1x32xf32> to vector<16x32xf32>
    %193 = arith.addf %191, %192 : vector<16x32xf32>
    %c0_69 = arith.constant 0 : index
    %c0_70 = arith.constant 0 : index
    %194 = vector.load %arg10[%c0_69, %c0_70] : memref<32x32xf32, #tpu.memory_space<vmem>>, vector<32x32xf32>
    %cst_71 = arith.constant dense<0.000000e+00> : vector<16x32xf32>
    %195 = tpu.matmul %193, %194, %cst_71 {dimension_numbers = #tpu.dot_dimension_numbers<[1], [0], [0], [1], [0, 0, 1, 1], [], []>} : vector<16x32xf32>, vector<32x32xf32>, vector<16x32xf32> -> vector<16x32xf32>
    %c0_72 = arith.constant 0 : index
    %c0_73 = arith.constant 0 : index
    %196 = vector.load %arg11[%c0_72, %c0_73] : memref<1x32xf32, #tpu.memory_space<vmem>>, vector<1x32xf32>
    %197 = vector.broadcast %196 : vector<1x32xf32> to vector<16x32xf32>
    %198 = arith.addf %195, %197 : vector<16x32xf32>
    %c0_74 = arith.constant 0 : index
    %c0_75 = arith.constant 0 : index
    %199 = vector.load %arg12[%c0_74, %c0_75] : memref<32x32xf32, #tpu.memory_space<vmem>>, vector<32x32xf32>
    %cst_76 = arith.constant dense<0.000000e+00> : vector<16x32xf32>
    %200 = tpu.matmul %3, %199, %cst_76 {dimension_numbers = #tpu.dot_dimension_numbers<[1], [0], [0], [1], [0, 0, 1, 1], [], []>} : vector<16x32xf32>, vector<32x32xf32>, vector<16x32xf32> -> vector<16x32xf32>
    %c0_77 = arith.constant 0 : index
    %c0_78 = arith.constant 0 : index
    %201 = vector.load %arg13[%c0_77, %c0_78] : memref<1x32xf32, #tpu.memory_space<vmem>>, vector<1x32xf32>
    %202 = vector.broadcast %201 : vector<1x32xf32> to vector<16x32xf32>
    %203 = arith.addf %200, %202 : vector<16x32xf32>
    %c0_79 = arith.constant 0 : index
    %c0_80 = arith.constant 0 : index
    %204 = vector.load %arg14[%c0_79, %c0_80] : memref<32x128xf32, #tpu.memory_space<vmem>>, vector<32x128xf32>
    %cst_81 = arith.constant dense<0.000000e+00> : vector<16x128xf32>
    %205 = tpu.matmul %3, %204, %cst_81 {dimension_numbers = #tpu.dot_dimension_numbers<[1], [0], [0], [1], [0, 0, 1, 1], [], []>} : vector<16x32xf32>, vector<32x128xf32>, vector<16x128xf32> -> vector<16x128xf32>
    %c0_82 = arith.constant 0 : index
    %c0_83 = arith.constant 0 : index
    %206 = vector.load %arg15[%c0_82, %c0_83] : memref<1x128xf32, #tpu.memory_space<vmem>>, vector<1x128xf32>
    %207 = vector.broadcast %206 : vector<1x128xf32> to vector<16x128xf32>
    %208 = arith.addf %205, %207 : vector<16x128xf32>
    %c0_84 = arith.constant 0 : index
    %c0_85 = arith.constant 0 : index
    %209 = vector.load %arg16[%c0_84, %c0_85] : memref<1x32xf32, #tpu.memory_space<vmem>>, vector<1x32xf32>
    %210 = vector.extract_strided_slice %198 {offsets = [0, 0], sizes = [16, 8], strides = [1, 1]} : vector<16x32xf32> to vector<16x8xf32>
    %211 = vector.extract_strided_slice %198 {offsets = [0, 8], sizes = [16, 8], strides = [1, 1]} : vector<16x32xf32> to vector<16x8xf32>
    %212 = vector.extract_strided_slice %198 {offsets = [0, 16], sizes = [16, 8], strides = [1, 1]} : vector<16x32xf32> to vector<16x8xf32>
    %213 = vector.extract_strided_slice %198 {offsets = [0, 24], sizes = [16, 8], strides = [1, 1]} : vector<16x32xf32> to vector<16x8xf32>
    %214 = vector.extract_strided_slice %203 {offsets = [0, 0], sizes = [16, 8], strides = [1, 1]} : vector<16x32xf32> to vector<16x8xf32>
    %215 = vector.extract_strided_slice %203 {offsets = [0, 8], sizes = [16, 8], strides = [1, 1]} : vector<16x32xf32> to vector<16x8xf32>
    %216 = vector.extract_strided_slice %203 {offsets = [0, 16], sizes = [16, 8], strides = [1, 1]} : vector<16x32xf32> to vector<16x8xf32>
    %217 = vector.extract_strided_slice %203 {offsets = [0, 24], sizes = [16, 8], strides = [1, 1]} : vector<16x32xf32> to vector<16x8xf32>
    %218 = vector.extract_strided_slice %208 {offsets = [0, 0], sizes = [16, 32], strides = [1, 1]} : vector<16x128xf32> to vector<16x32xf32>
    %219 = vector.extract_strided_slice %208 {offsets = [0, 32], sizes = [16, 32], strides = [1, 1]} : vector<16x128xf32> to vector<16x32xf32>
    %220 = vector.extract_strided_slice %208 {offsets = [0, 64], sizes = [16, 32], strides = [1, 1]} : vector<16x128xf32> to vector<16x32xf32>
    %221 = vector.extract_strided_slice %208 {offsets = [0, 96], sizes = [16, 32], strides = [1, 1]} : vector<16x128xf32> to vector<16x32xf32>
    %cst_86 = arith.constant 0.000000e+00 : f32
    %222 = vector.broadcast %cst_86 : f32 to vector<8x32xf32>
    %223 = vector.extract_strided_slice %210 {offsets = [0, 0], sizes = [8, 8], strides = [1, 1]} : vector<16x8xf32> to vector<8x8xf32>
    %224 = vector.extract_strided_slice %214 {offsets = [0, 0], sizes = [8, 8], strides = [1, 1]} : vector<16x8xf32> to vector<8x8xf32>
    %cst_87 = arith.constant dense<0.000000e+00> : vector<8x8xf32>
    %225 = tpu.matmul %223, %224, %cst_87 {dimension_numbers = #tpu.dot_dimension_numbers<[1], [1], [0], [0], [0, 0, 1, 0], [], []>} : vector<8x8xf32>, vector<8x8xf32>, vector<8x8xf32> -> vector<8x8xf32>
    %cst_88 = arith.constant dense<0xFF800000> : vector<8xf32>
    %226 = vector.multi_reduction <maximumf>, %225, %cst_88 [1] : vector<8x8xf32> to vector<8xf32>
    %227 = vector.shape_cast %226 : vector<8xf32> to vector<8x1xf32>
    %228 = vector.broadcast %227 : vector<8x1xf32> to vector<8x8xf32>
    %229 = arith.subf %225, %228 : vector<8x8xf32>
    %230 = math.exp %229 : vector<8x8xf32>
    %cst_89 = arith.constant dense<0.000000e+00> : vector<8xf32>
    %231 = vector.multi_reduction <add>, %230, %cst_89 [1] : vector<8x8xf32> to vector<8xf32>
    %232 = vector.shape_cast %231 : vector<8xf32> to vector<8x1xf32>
    %233 = tpu.reciprocal %232 {approx = true} : vector<8x1xf32> -> vector<8x1xf32>
    %234 = vector.broadcast %233 : vector<8x1xf32> to vector<8x8xf32>
    %235 = arith.mulf %230, %234 : vector<8x8xf32>
    %236 = vector.extract_strided_slice %218 {offsets = [0, 0], sizes = [8, 32], strides = [1, 1]} : vector<16x32xf32> to vector<8x32xf32>
    %cst_90 = arith.constant dense<0.000000e+00> : vector<8x32xf32>
    %237 = tpu.matmul %235, %236, %cst_90 {dimension_numbers = #tpu.dot_dimension_numbers<[1], [0], [0], [1], [0, 0, 1, 1], [], []>} : vector<8x8xf32>, vector<8x32xf32>, vector<8x32xf32> -> vector<8x32xf32>
    %238 = arith.addf %222, %237 : vector<8x32xf32>
    %239 = vector.extract_strided_slice %211 {offsets = [0, 0], sizes = [8, 8], strides = [1, 1]} : vector<16x8xf32> to vector<8x8xf32>
    %240 = vector.extract_strided_slice %215 {offsets = [0, 0], sizes = [8, 8], strides = [1, 1]} : vector<16x8xf32> to vector<8x8xf32>
    %cst_91 = arith.constant dense<0.000000e+00> : vector<8x8xf32>
    %241 = tpu.matmul %239, %240, %cst_91 {dimension_numbers = #tpu.dot_dimension_numbers<[1], [1], [0], [0], [0, 0, 1, 0], [], []>} : vector<8x8xf32>, vector<8x8xf32>, vector<8x8xf32> -> vector<8x8xf32>
    %cst_92 = arith.constant dense<0xFF800000> : vector<8xf32>
    %242 = vector.multi_reduction <maximumf>, %241, %cst_92 [1] : vector<8x8xf32> to vector<8xf32>
    %243 = vector.shape_cast %242 : vector<8xf32> to vector<8x1xf32>
    %244 = vector.broadcast %243 : vector<8x1xf32> to vector<8x8xf32>
    %245 = arith.subf %241, %244 : vector<8x8xf32>
    %246 = math.exp %245 : vector<8x8xf32>
    %cst_93 = arith.constant dense<0.000000e+00> : vector<8xf32>
    %247 = vector.multi_reduction <add>, %246, %cst_93 [1] : vector<8x8xf32> to vector<8xf32>
    %248 = vector.shape_cast %247 : vector<8xf32> to vector<8x1xf32>
    %249 = tpu.reciprocal %248 {approx = true} : vector<8x1xf32> -> vector<8x1xf32>
    %250 = vector.broadcast %249 : vector<8x1xf32> to vector<8x8xf32>
    %251 = arith.mulf %246, %250 : vector<8x8xf32>
    %252 = vector.extract_strided_slice %219 {offsets = [0, 0], sizes = [8, 32], strides = [1, 1]} : vector<16x32xf32> to vector<8x32xf32>
    %cst_94 = arith.constant dense<0.000000e+00> : vector<8x32xf32>
    %253 = tpu.matmul %251, %252, %cst_94 {dimension_numbers = #tpu.dot_dimension_numbers<[1], [0], [0], [1], [0, 0, 1, 1], [], []>} : vector<8x8xf32>, vector<8x32xf32>, vector<8x32xf32> -> vector<8x32xf32>
    %254 = arith.addf %238, %253 : vector<8x32xf32>
    %255 = vector.extract_strided_slice %212 {offsets = [0, 0], sizes = [8, 8], strides = [1, 1]} : vector<16x8xf32> to vector<8x8xf32>
    %256 = vector.extract_strided_slice %216 {offsets = [0, 0], sizes = [8, 8], strides = [1, 1]} : vector<16x8xf32> to vector<8x8xf32>
    %cst_95 = arith.constant dense<0.000000e+00> : vector<8x8xf32>
    %257 = tpu.matmul %255, %256, %cst_95 {dimension_numbers = #tpu.dot_dimension_numbers<[1], [1], [0], [0], [0, 0, 1, 0], [], []>} : vector<8x8xf32>, vector<8x8xf32>, vector<8x8xf32> -> vector<8x8xf32>
    %cst_96 = arith.constant dense<0xFF800000> : vector<8xf32>
    %258 = vector.multi_reduction <maximumf>, %257, %cst_96 [1] : vector<8x8xf32> to vector<8xf32>
    %259 = vector.shape_cast %258 : vector<8xf32> to vector<8x1xf32>
    %260 = vector.broadcast %259 : vector<8x1xf32> to vector<8x8xf32>
    %261 = arith.subf %257, %260 : vector<8x8xf32>
    %262 = math.exp %261 : vector<8x8xf32>
    %cst_97 = arith.constant dense<0.000000e+00> : vector<8xf32>
    %263 = vector.multi_reduction <add>, %262, %cst_97 [1] : vector<8x8xf32> to vector<8xf32>
    %264 = vector.shape_cast %263 : vector<8xf32> to vector<8x1xf32>
    %265 = tpu.reciprocal %264 {approx = true} : vector<8x1xf32> -> vector<8x1xf32>
    %266 = vector.broadcast %265 : vector<8x1xf32> to vector<8x8xf32>
    %267 = arith.mulf %262, %266 : vector<8x8xf32>
    %268 = vector.extract_strided_slice %220 {offsets = [0, 0], sizes = [8, 32], strides = [1, 1]} : vector<16x32xf32> to vector<8x32xf32>
    %cst_98 = arith.constant dense<0.000000e+00> : vector<8x32xf32>
    %269 = tpu.matmul %267, %268, %cst_98 {dimension_numbers = #tpu.dot_dimension_numbers<[1], [0], [0], [1], [0, 0, 1, 1], [], []>} : vector<8x8xf32>, vector<8x32xf32>, vector<8x32xf32> -> vector<8x32xf32>
    %270 = arith.addf %254, %269 : vector<8x32xf32>
    %271 = vector.extract_strided_slice %213 {offsets = [0, 0], sizes = [8, 8], strides = [1, 1]} : vector<16x8xf32> to vector<8x8xf32>
    %272 = vector.extract_strided_slice %217 {offsets = [0, 0], sizes = [8, 8], strides = [1, 1]} : vector<16x8xf32> to vector<8x8xf32>
    %cst_99 = arith.constant dense<0.000000e+00> : vector<8x8xf32>
    %273 = tpu.matmul %271, %272, %cst_99 {dimension_numbers = #tpu.dot_dimension_numbers<[1], [1], [0], [0], [0, 0, 1, 0], [], []>} : vector<8x8xf32>, vector<8x8xf32>, vector<8x8xf32> -> vector<8x8xf32>
    %cst_100 = arith.constant dense<0xFF800000> : vector<8xf32>
    %274 = vector.multi_reduction <maximumf>, %273, %cst_100 [1] : vector<8x8xf32> to vector<8xf32>
    %275 = vector.shape_cast %274 : vector<8xf32> to vector<8x1xf32>
    %276 = vector.broadcast %275 : vector<8x1xf32> to vector<8x8xf32>
    %277 = arith.subf %273, %276 : vector<8x8xf32>
    %278 = math.exp %277 : vector<8x8xf32>
    %cst_101 = arith.constant dense<0.000000e+00> : vector<8xf32>
    %279 = vector.multi_reduction <add>, %278, %cst_101 [1] : vector<8x8xf32> to vector<8xf32>
    %280 = vector.shape_cast %279 : vector<8xf32> to vector<8x1xf32>
    %281 = tpu.reciprocal %280 {approx = true} : vector<8x1xf32> -> vector<8x1xf32>
    %282 = vector.broadcast %281 : vector<8x1xf32> to vector<8x8xf32>
    %283 = arith.mulf %278, %282 : vector<8x8xf32>
    %284 = vector.extract_strided_slice %221 {offsets = [0, 0], sizes = [8, 32], strides = [1, 1]} : vector<16x32xf32> to vector<8x32xf32>
    %cst_102 = arith.constant dense<0.000000e+00> : vector<8x32xf32>
    %285 = tpu.matmul %283, %284, %cst_102 {dimension_numbers = #tpu.dot_dimension_numbers<[1], [0], [0], [1], [0, 0, 1, 1], [], []>} : vector<8x8xf32>, vector<8x32xf32>, vector<8x32xf32> -> vector<8x32xf32>
    %286 = arith.addf %270, %285 : vector<8x32xf32>
    %287 = vector.broadcast %209 : vector<1x32xf32> to vector<8x32xf32>
    %288 = arith.addf %286, %287 : vector<8x32xf32>
    %cst_103 = arith.constant 0.000000e+00 : f32
    %289 = vector.broadcast %cst_103 : f32 to vector<8x32xf32>
    %290 = vector.extract_strided_slice %210 {offsets = [8, 0], sizes = [8, 8], strides = [1, 1]} : vector<16x8xf32> to vector<8x8xf32>
    %291 = vector.extract_strided_slice %214 {offsets = [8, 0], sizes = [8, 8], strides = [1, 1]} : vector<16x8xf32> to vector<8x8xf32>
    %cst_104 = arith.constant dense<0.000000e+00> : vector<8x8xf32>
    %292 = tpu.matmul %290, %291, %cst_104 {dimension_numbers = #tpu.dot_dimension_numbers<[1], [1], [0], [0], [0, 0, 1, 0], [], []>} : vector<8x8xf32>, vector<8x8xf32>, vector<8x8xf32> -> vector<8x8xf32>
    %cst_105 = arith.constant dense<0xFF800000> : vector<8xf32>
    %293 = vector.multi_reduction <maximumf>, %292, %cst_105 [1] : vector<8x8xf32> to vector<8xf32>
    %294 = vector.shape_cast %293 : vector<8xf32> to vector<8x1xf32>
    %295 = vector.broadcast %294 : vector<8x1xf32> to vector<8x8xf32>
    %296 = arith.subf %292, %295 : vector<8x8xf32>
    %297 = math.exp %296 : vector<8x8xf32>
    %cst_106 = arith.constant dense<0.000000e+00> : vector<8xf32>
    %298 = vector.multi_reduction <add>, %297, %cst_106 [1] : vector<8x8xf32> to vector<8xf32>
    %299 = vector.shape_cast %298 : vector<8xf32> to vector<8x1xf32>
    %300 = tpu.reciprocal %299 {approx = true} : vector<8x1xf32> -> vector<8x1xf32>
    %301 = vector.broadcast %300 : vector<8x1xf32> to vector<8x8xf32>
    %302 = arith.mulf %297, %301 : vector<8x8xf32>
    %303 = vector.extract_strided_slice %218 {offsets = [8, 0], sizes = [8, 32], strides = [1, 1]} : vector<16x32xf32> to vector<8x32xf32>
    %cst_107 = arith.constant dense<0.000000e+00> : vector<8x32xf32>
    %304 = tpu.matmul %302, %303, %cst_107 {dimension_numbers = #tpu.dot_dimension_numbers<[1], [0], [0], [1], [0, 0, 1, 1], [], []>} : vector<8x8xf32>, vector<8x32xf32>, vector<8x32xf32> -> vector<8x32xf32>
    %305 = arith.addf %289, %304 : vector<8x32xf32>
    %306 = vector.extract_strided_slice %211 {offsets = [8, 0], sizes = [8, 8], strides = [1, 1]} : vector<16x8xf32> to vector<8x8xf32>
    %307 = vector.extract_strided_slice %215 {offsets = [8, 0], sizes = [8, 8], strides = [1, 1]} : vector<16x8xf32> to vector<8x8xf32>
    %cst_108 = arith.constant dense<0.000000e+00> : vector<8x8xf32>
    %308 = tpu.matmul %306, %307, %cst_108 {dimension_numbers = #tpu.dot_dimension_numbers<[1], [1], [0], [0], [0, 0, 1, 0], [], []>} : vector<8x8xf32>, vector<8x8xf32>, vector<8x8xf32> -> vector<8x8xf32>
    %cst_109 = arith.constant dense<0xFF800000> : vector<8xf32>
    %309 = vector.multi_reduction <maximumf>, %308, %cst_109 [1] : vector<8x8xf32> to vector<8xf32>
    %310 = vector.shape_cast %309 : vector<8xf32> to vector<8x1xf32>
    %311 = vector.broadcast %310 : vector<8x1xf32> to vector<8x8xf32>
    %312 = arith.subf %308, %311 : vector<8x8xf32>
    %313 = math.exp %312 : vector<8x8xf32>
    %cst_110 = arith.constant dense<0.000000e+00> : vector<8xf32>
    %314 = vector.multi_reduction <add>, %313, %cst_110 [1] : vector<8x8xf32> to vector<8xf32>
    %315 = vector.shape_cast %314 : vector<8xf32> to vector<8x1xf32>
    %316 = tpu.reciprocal %315 {approx = true} : vector<8x1xf32> -> vector<8x1xf32>
    %317 = vector.broadcast %316 : vector<8x1xf32> to vector<8x8xf32>
    %318 = arith.mulf %313, %317 : vector<8x8xf32>
    %319 = vector.extract_strided_slice %219 {offsets = [8, 0], sizes = [8, 32], strides = [1, 1]} : vector<16x32xf32> to vector<8x32xf32>
    %cst_111 = arith.constant dense<0.000000e+00> : vector<8x32xf32>
    %320 = tpu.matmul %318, %319, %cst_111 {dimension_numbers = #tpu.dot_dimension_numbers<[1], [0], [0], [1], [0, 0, 1, 1], [], []>} : vector<8x8xf32>, vector<8x32xf32>, vector<8x32xf32> -> vector<8x32xf32>
    %321 = arith.addf %305, %320 : vector<8x32xf32>
    %322 = vector.extract_strided_slice %212 {offsets = [8, 0], sizes = [8, 8], strides = [1, 1]} : vector<16x8xf32> to vector<8x8xf32>
    %323 = vector.extract_strided_slice %216 {offsets = [8, 0], sizes = [8, 8], strides = [1, 1]} : vector<16x8xf32> to vector<8x8xf32>
    %cst_112 = arith.constant dense<0.000000e+00> : vector<8x8xf32>
    %324 = tpu.matmul %322, %323, %cst_112 {dimension_numbers = #tpu.dot_dimension_numbers<[1], [1], [0], [0], [0, 0, 1, 0], [], []>} : vector<8x8xf32>, vector<8x8xf32>, vector<8x8xf32> -> vector<8x8xf32>
    %cst_113 = arith.constant dense<0xFF800000> : vector<8xf32>
    %325 = vector.multi_reduction <maximumf>, %324, %cst_113 [1] : vector<8x8xf32> to vector<8xf32>
    %326 = vector.shape_cast %325 : vector<8xf32> to vector<8x1xf32>
    %327 = vector.broadcast %326 : vector<8x1xf32> to vector<8x8xf32>
    %328 = arith.subf %324, %327 : vector<8x8xf32>
    %329 = math.exp %328 : vector<8x8xf32>
    %cst_114 = arith.constant dense<0.000000e+00> : vector<8xf32>
    %330 = vector.multi_reduction <add>, %329, %cst_114 [1] : vector<8x8xf32> to vector<8xf32>
    %331 = vector.shape_cast %330 : vector<8xf32> to vector<8x1xf32>
    %332 = tpu.reciprocal %331 {approx = true} : vector<8x1xf32> -> vector<8x1xf32>
    %333 = vector.broadcast %332 : vector<8x1xf32> to vector<8x8xf32>
    %334 = arith.mulf %329, %333 : vector<8x8xf32>
    %335 = vector.extract_strided_slice %220 {offsets = [8, 0], sizes = [8, 32], strides = [1, 1]} : vector<16x32xf32> to vector<8x32xf32>
    %cst_115 = arith.constant dense<0.000000e+00> : vector<8x32xf32>
    %336 = tpu.matmul %334, %335, %cst_115 {dimension_numbers = #tpu.dot_dimension_numbers<[1], [0], [0], [1], [0, 0, 1, 1], [], []>} : vector<8x8xf32>, vector<8x32xf32>, vector<8x32xf32> -> vector<8x32xf32>
    %337 = arith.addf %321, %336 : vector<8x32xf32>
    %338 = vector.extract_strided_slice %213 {offsets = [8, 0], sizes = [8, 8], strides = [1, 1]} : vector<16x8xf32> to vector<8x8xf32>
    %339 = vector.extract_strided_slice %217 {offsets = [8, 0], sizes = [8, 8], strides = [1, 1]} : vector<16x8xf32> to vector<8x8xf32>
    %cst_116 = arith.constant dense<0.000000e+00> : vector<8x8xf32>
    %340 = tpu.matmul %338, %339, %cst_116 {dimension_numbers = #tpu.dot_dimension_numbers<[1], [1], [0], [0], [0, 0, 1, 0], [], []>} : vector<8x8xf32>, vector<8x8xf32>, vector<8x8xf32> -> vector<8x8xf32>
    %cst_117 = arith.constant dense<0xFF800000> : vector<8xf32>
    %341 = vector.multi_reduction <maximumf>, %340, %cst_117 [1] : vector<8x8xf32> to vector<8xf32>
    %342 = vector.shape_cast %341 : vector<8xf32> to vector<8x1xf32>
    %343 = vector.broadcast %342 : vector<8x1xf32> to vector<8x8xf32>
    %344 = arith.subf %340, %343 : vector<8x8xf32>
    %345 = math.exp %344 : vector<8x8xf32>
    %cst_118 = arith.constant dense<0.000000e+00> : vector<8xf32>
    %346 = vector.multi_reduction <add>, %345, %cst_118 [1] : vector<8x8xf32> to vector<8xf32>
    %347 = vector.shape_cast %346 : vector<8xf32> to vector<8x1xf32>
    %348 = tpu.reciprocal %347 {approx = true} : vector<8x1xf32> -> vector<8x1xf32>
    %349 = vector.broadcast %348 : vector<8x1xf32> to vector<8x8xf32>
    %350 = arith.mulf %345, %349 : vector<8x8xf32>
    %351 = vector.extract_strided_slice %221 {offsets = [8, 0], sizes = [8, 32], strides = [1, 1]} : vector<16x32xf32> to vector<8x32xf32>
    %cst_119 = arith.constant dense<0.000000e+00> : vector<8x32xf32>
    %352 = tpu.matmul %350, %351, %cst_119 {dimension_numbers = #tpu.dot_dimension_numbers<[1], [0], [0], [1], [0, 0, 1, 1], [], []>} : vector<8x8xf32>, vector<8x32xf32>, vector<8x32xf32> -> vector<8x32xf32>
    %353 = arith.addf %337, %352 : vector<8x32xf32>
    %354 = vector.broadcast %209 : vector<1x32xf32> to vector<8x32xf32>
    %355 = arith.addf %353, %354 : vector<8x32xf32>
    %c0_120 = arith.constant 0 : index
    %c0_121 = arith.constant 0 : index
    %356 = vector.load %arg24[%c0_120, %c0_121] : memref<16x32xf32, #tpu.memory_space<vmem>>, vector<8x32xf32>
    tpu.vector_store %arg24[%c0_120, %c0_121], %288 {strides = array<i32>} : memref<16x32xf32, #tpu.memory_space<vmem>>, vector<8x32xf32>,
    %c8_122 = arith.constant 8 : index
    %c0_123 = arith.constant 0 : index
    %357 = vector.load %arg24[%c8_122, %c0_123] : memref<16x32xf32, #tpu.memory_space<vmem>>, vector<8x32xf32>
    tpu.vector_store %arg24[%c8_122, %c0_123], %355 {strides = array<i32>} : memref<16x32xf32, #tpu.memory_space<vmem>>, vector<8x32xf32>,
    %c0_124 = arith.constant 0 : index
    %c0_125 = arith.constant 0 : index
    %358 = vector.load %arg24[%c0_124, %c0_125] : memref<16x32xf32, #tpu.memory_space<vmem>>, vector<16x32xf32>
    %359 = arith.addf %193, %358 : vector<16x32xf32>
    %cst_126 = arith.constant dense<0.000000e+00> : vector<16xf32>
    %360 = vector.multi_reduction <add>, %359, %cst_126 [1] : vector<16x32xf32> to vector<16xf32>
    %361 = vector.shape_cast %360 : vector<16xf32> to vector<16x1xf32>
    %cst_127 = arith.constant 3.200000e+01 : f32
    %362 = vector.broadcast %cst_127 : f32 to vector<16x1xf32>
    %363 = arith.divf %361, %362 : vector<16x1xf32>
    %364 = vector.broadcast %363 : vector<16x1xf32> to vector<16x32xf32>
    %365 = arith.subf %359, %364 : vector<16x32xf32>
    %366 = arith.mulf %365, %365 : vector<16x32xf32>
    %cst_128 = arith.constant dense<0.000000e+00> : vector<16xf32>
    %367 = vector.multi_reduction <add>, %366, %cst_128 [1] : vector<16x32xf32> to vector<16xf32>
    %368 = vector.shape_cast %367 : vector<16xf32> to vector<16x1xf32>
    %cst_129 = arith.constant 3.200000e+01 : f32
    %369 = vector.broadcast %cst_129 : f32 to vector<16x1xf32>
    %370 = arith.divf %368, %369 : vector<16x1xf32>
    %371 = vector.broadcast %363 : vector<16x1xf32> to vector<16x32xf32>
    %372 = arith.subf %359, %371 : vector<16x32xf32>
    %cst_130 = arith.constant 9.99999974E-6 : f32
    %373 = vector.broadcast %cst_130 : f32 to vector<16x1xf32>
    %374 = arith.addf %370, %373 : vector<16x1xf32>
    %375 = math.rsqrt %374 : vector<16x1xf32>
    %376 = vector.broadcast %375 : vector<16x1xf32> to vector<16x32xf32>
    %377 = arith.mulf %372, %376 : vector<16x32xf32>
    %378 = vector.broadcast %4 : vector<1x32xf32> to vector<16x32xf32>
    %379 = arith.mulf %377, %378 : vector<16x32xf32>
    %380 = vector.broadcast %5 : vector<1x32xf32> to vector<16x32xf32>
    %381 = arith.addf %379, %380 : vector<16x32xf32>
    %c0_131 = arith.constant 0 : index
    %c0_132 = arith.constant 0 : index
    %382 = vector.load %arg19[%c0_131, %c0_132] : memref<32x128xf32, #tpu.memory_space<vmem>>, vector<32x128xf32>
    %cst_133 = arith.constant dense<0.000000e+00> : vector<16x128xf32>
    %383 = tpu.matmul %381, %382, %cst_133 {dimension_numbers = #tpu.dot_dimension_numbers<[1], [0], [0], [1], [0, 0, 1, 1], [], []>} : vector<16x32xf32>, vector<32x128xf32>, vector<16x128xf32> -> vector<16x128xf32>
    %c0_134 = arith.constant 0 : index
    %c0_135 = arith.constant 0 : index
    %384 = vector.load %arg20[%c0_134, %c0_135] : memref<1x128xf32, #tpu.memory_space<vmem>>, vector<1x128xf32>
    %385 = vector.broadcast %384 : vector<1x128xf32> to vector<16x128xf32>
    %386 = arith.addf %383, %385 : vector<16x128xf32>
    %cst_136 = arith.constant 0.000000e+00 : f32
    %387 = vector.broadcast %cst_136 : f32 to vector<16x128xf32>
    %388 = arith.maximumf %386, %387 : vector<16x128xf32>
    %c0_137 = arith.constant 0 : index
    %c0_138 = arith.constant 0 : index
    %389 = vector.load %arg21[%c0_137, %c0_138] : memref<128x32xf32, #tpu.memory_space<vmem>>, vector<128x32xf32>
    %cst_139 = arith.constant dense<0.000000e+00> : vector<16x32xf32>
    %390 = tpu.matmul %388, %389, %cst_139 {dimension_numbers = #tpu.dot_dimension_numbers<[1], [0], [0], [1], [0, 0, 1, 1], [], []>} : vector<16x128xf32>, vector<128x32xf32>, vector<16x32xf32> -> vector<16x32xf32>
    %c0_140 = arith.constant 0 : index
    %c0_141 = arith.constant 0 : index
    %391 = vector.load %arg22[%c0_140, %c0_141] : memref<1x32xf32, #tpu.memory_space<vmem>>, vector<1x32xf32>
    %392 = vector.broadcast %391 : vector<1x32xf32> to vector<16x32xf32>
    %393 = arith.addf %390, %392 : vector<16x32xf32>
    %394 = arith.addf %381, %393 : vector<16x32xf32>
    %cst_142 = arith.constant dense<0.000000e+00> : vector<16xf32>
    %395 = vector.multi_reduction <add>, %394, %cst_142 [1] : vector<16x32xf32> to vector<16xf32>
    %396 = vector.shape_cast %395 : vector<16xf32> to vector<16x1xf32>
    %cst_143 = arith.constant 3.200000e+01 : f32
    %397 = vector.broadcast %cst_143 : f32 to vector<16x1xf32>
    %398 = arith.divf %396, %397 : vector<16x1xf32>
    %399 = vector.broadcast %398 : vector<16x1xf32> to vector<16x32xf32>
    %400 = arith.subf %394, %399 : vector<16x32xf32>
    %401 = arith.mulf %400, %400 : vector<16x32xf32>
    %cst_144 = arith.constant dense<0.000000e+00> : vector<16xf32>
    %402 = vector.multi_reduction <add>, %401, %cst_144 [1] : vector<16x32xf32> to vector<16xf32>
    %403 = vector.shape_cast %402 : vector<16xf32> to vector<16x1xf32>
    %cst_145 = arith.constant 3.200000e+01 : f32
    %404 = vector.broadcast %cst_145 : f32 to vector<16x1xf32>
    %405 = arith.divf %403, %404 : vector<16x1xf32>
    %406 = vector.broadcast %398 : vector<16x1xf32> to vector<16x32xf32>
    %407 = arith.subf %394, %406 : vector<16x32xf32>
    %cst_146 = arith.constant 9.99999974E-6 : f32
    %408 = vector.broadcast %cst_146 : f32 to vector<16x1xf32>
    %409 = arith.addf %405, %408 : vector<16x1xf32>
    %410 = math.rsqrt %409 : vector<16x1xf32>
    %411 = vector.broadcast %410 : vector<16x1xf32> to vector<16x32xf32>
    %412 = arith.mulf %407, %411 : vector<16x32xf32>
    %413 = vector.broadcast %4 : vector<1x32xf32> to vector<16x32xf32>
    %414 = arith.mulf %412, %413 : vector<16x32xf32>
    %415 = vector.broadcast %5 : vector<1x32xf32> to vector<16x32xf32>
    %416 = arith.addf %414, %415 : vector<16x32xf32>
    %417 = vector.extract_strided_slice %416 {offsets = [0, 0], sizes = [8, 32], strides = [1, 1]} : vector<16x32xf32> to vector<8x32xf32>
    %c0_147 = arith.constant 0 : index
    %c0_148 = arith.constant 0 : index
    %c0_149 = arith.constant 0 : index
    %418 = vector.load %arg23[%c0_147, %c0_148, %c0_149] : memref<2x8x32xf32, #tpu.memory_space<vmem>>, vector<1x8x32xf32>
    %419 = vector.shape_cast %418 : vector<1x8x32xf32> to vector<8x32xf32>
    %420 = vector.shape_cast %417 : vector<8x32xf32> to vector<1x8x32xf32>
    tpu.vector_store %arg23[%c0_147, %c0_148, %c0_149], %420 {strides = array<i32>} : memref<2x8x32xf32, #tpu.memory_space<vmem>>, vector<1x8x32xf32>,
    %421 = vector.extract_strided_slice %416 {offsets = [8, 0], sizes = [8, 32], strides = [1, 1]} : vector<16x32xf32> to vector<8x32xf32>
    %c1 = arith.constant 1 : index
    %c0_150 = arith.constant 0 : index
    %c0_151 = arith.constant 0 : index
    %422 = vector.load %arg23[%c1, %c0_150, %c0_151] : memref<2x8x32xf32, #tpu.memory_space<vmem>>, vector<1x8x32xf32>
    %423 = vector.shape_cast %422 : vector<1x8x32xf32> to vector<8x32xf32>
    %424 = vector.shape_cast %421 : vector<8x32xf32> to vector<1x8x32xf32>
    tpu.vector_store %arg23[%c1, %c0_150, %c0_151], %424 {strides = array<i32>} : memref<2x8x32xf32, #tpu.memory_space<vmem>>, vector<1x8x32xf32>,
    return
  }
  func.func @transform_0(%arg0: i32) -> (i32, i32, i32) {
    %c0_i32 = arith.constant 0 : i32
    %c0_i32_0 = arith.constant 0 : i32
    %c0_i32_1 = arith.constant 0 : i32
    return %arg0, %c0_i32, %c0_i32_0 : i32, i32, i32
  }
  func.func @transform_1(%arg0: i32) -> (i32, i32, i32) {
    %c0_i32 = arith.constant 0 : i32
    %c0_i32_0 = arith.constant 0 : i32
    %c0_i32_1 = arith.constant 0 : i32
    return %arg0, %c0_i32, %c0_i32_0 : i32, i32, i32
  }
  func.func @transform_2(%arg0: i32) -> (i32, i32) {
    %c0_i32 = arith.constant 0 : i32
    %c0_i32_0 = arith.constant 0 : i32
    %c0_i32_1 = arith.constant 0 : i32
    return %c0_i32, %c0_i32_0 : i32, i32
  }
  func.func @transform_3(%arg0: i32) -> (i32, i32) {
    %c0_i32 = arith.constant 0 : i32
    %c0_i32_0 = arith.constant 0 : i32
    %c0_i32_1 = arith.constant 0 : i32
    return %c0_i32, %c0_i32_0 : i32, i32
  }
  func.func @transform_4(%arg0: i32) -> (i32, i32) {
    %c0_i32 = arith.constant 0 : i32
    %c0_i32_0 = arith.constant 0 : i32
    %c0_i32_1 = arith.constant 0 : i32
    return %c0_i32, %c0_i32_0 : i32, i32
  }
  func.func @transform_5(%arg0: i32) -> (i32, i32) {
    %c0_i32 = arith.constant 0 : i32
    %c0_i32_0 = arith.constant 0 : i32
    %c0_i32_1 = arith.constant 0 : i32
    return %c0_i32, %c0_i32_0 : i32, i32
  }
  func.func @transform_6(%arg0: i32) -> (i32, i32) {
    %c0_i32 = arith.constant 0 : i32
    %c0_i32_0 = arith.constant 0 : i32
    %c0_i32_1 = arith.constant 0 : i32
    return %c0_i32, %c0_i32_0 : i32, i32
  }
  func.func @transform_7(%arg0: i32) -> (i32, i32) {
    %c0_i32 = arith.constant 0 : i32
    %c0_i32_0 = arith.constant 0 : i32
    %c0_i32_1 = arith.constant 0 : i32
    return %c0_i32, %c0_i32_0 : i32, i32
  }
  func.func @transform_8(%arg0: i32) -> (i32, i32) {
    %c0_i32 = arith.constant 0 : i32
    %c0_i32_0 = arith.constant 0 : i32
    %c0_i32_1 = arith.constant 0 : i32
    return %c0_i32, %c0_i32_0 : i32, i32
  }
  func.func @transform_9(%arg0: i32) -> (i32, i32) {
    %c0_i32 = arith.constant 0 : i32
    %c0_i32_0 = arith.constant 0 : i32
    %c0_i32_1 = arith.constant 0 : i32
    return %c0_i32, %c0_i32_0 : i32, i32
  }
  func.func @transform_10(%arg0: i32) -> (i32, i32) {
    %c0_i32 = arith.constant 0 : i32
    %c0_i32_0 = arith.constant 0 : i32
    %c0_i32_1 = arith.constant 0 : i32
    return %c0_i32, %c0_i32_0 : i32, i32
  }
  func.func @transform_11(%arg0: i32) -> (i32, i32) {
    %c0_i32 = arith.constant 0 : i32
    %c0_i32_0 = arith.constant 0 : i32
    %c0_i32_1 = arith.constant 0 : i32
    return %c0_i32, %c0_i32_0 : i32, i32
  }
  func.func @transform_12(%arg0: i32) -> (i32, i32) {
    %c0_i32 = arith.constant 0 : i32
    %c0_i32_0 = arith.constant 0 : i32
    %c0_i32_1 = arith.constant 0 : i32
    return %c0_i32, %c0_i32_0 : i32, i32
  }
  func.func @transform_13(%arg0: i32) -> (i32, i32) {
    %c0_i32 = arith.constant 0 : i32
    %c0_i32_0 = arith.constant 0 : i32
    %c0_i32_1 = arith.constant 0 : i32
    return %c0_i32, %c0_i32_0 : i32, i32
  }
  func.func @transform_14(%arg0: i32) -> (i32, i32) {
    %c0_i32 = arith.constant 0 : i32
    %c0_i32_0 = arith.constant 0 : i32
    %c0_i32_1 = arith.constant 0 : i32
    return %c0_i32, %c0_i32_0 : i32, i32
  }
  func.func @transform_15(%arg0: i32) -> (i32, i32) {
    %c0_i32 = arith.constant 0 : i32
    %c0_i32_0 = arith.constant 0 : i32
    %c0_i32_1 = arith.constant 0 : i32
    return %c0_i32, %c0_i32_0 : i32, i32
  }
  func.func @transform_16(%arg0: i32) -> (i32, i32) {
    %c0_i32 = arith.constant 0 : i32
    %c0_i32_0 = arith.constant 0 : i32
    %c0_i32_1 = arith.constant 0 : i32
    return %c0_i32, %c0_i32_0 : i32, i32
  }
  func.func @transform_17(%arg0: i32) -> (i32, i32) {
    %c0_i32 = arith.constant 0 : i32
    %c0_i32_0 = arith.constant 0 : i32
    %c0_i32_1 = arith.constant 0 : i32
    return %c0_i32, %c0_i32_0 : i32, i32
  }
  func.func @transform_18(%arg0: i32) -> (i32, i32) {
    %c0_i32 = arith.constant 0 : i32
    %c0_i32_0 = arith.constant 0 : i32
    %c0_i32_1 = arith.constant 0 : i32
    return %c0_i32, %c0_i32_0 : i32, i32
  }
  func.func @transform_19(%arg0: i32) -> (i32, i32) {
    %c0_i32 = arith.constant 0 : i32
    %c0_i32_0 = arith.constant 0 : i32
    %c0_i32_1 = arith.constant 0 : i32
    return %c0_i32, %c0_i32_0 : i32, i32
  }
  func.func @transform_20(%arg0: i32) -> (i32, i32) {
    %c0_i32 = arith.constant 0 : i32
    %c0_i32_0 = arith.constant 0 : i32
    %c0_i32_1 = arith.constant 0 : i32
    return %c0_i32, %c0_i32_0 : i32, i32
  }
  func.func @transform_21(%arg0: i32) -> (i32, i32) {
    %c0_i32 = arith.constant 0 : i32
    %c0_i32_0 = arith.constant 0 : i32
    %c0_i32_1 = arith.constant 0 : i32
    return %c0_i32, %c0_i32_0 : i32, i32
  }
  func.func @transform_22(%arg0: i32) -> (i32, i32, i32) {
    %c0_i32 = arith.constant 0 : i32
    %c0_i32_0 = arith.constant 0 : i32
    %c0_i32_1 = arith.constant 0 : i32
    return %arg0, %c0_i32, %c0_i32_0 : i32, i32, i32
  }
}

</mosaic_0001>

<bundles_post_ra>
// kernel: tpu_custom_call.1
= control target key start
LH: loop header
LB: loop body
LE: loop exit
PB: predicated region body
PF: predicated region fallthrough
CT: control target
= control target key end

     0   :  { %s5549_s0 = inlined_call_operand.hbm [shape: f32[2,8,32], index: 0, kind: input, shape index: {}]   ;;  %s5550_s1 = inlined_call_operand.hbm [shape: f32[2,8,32], index: 1, kind: input, shape index: {}]   ;;  %s5551_s2 = inlined_call_operand.vmem [shape: f32[32,32], index: 2, kind: input, shape index: {}]   ;;  %s5552_s3 = inlined_call_operand.hbm [shape: f32[1,32], index: 3, kind: input, shape index: {}]   ;;  %s5553_s4 = inlined_call_operand.vmem [shape: f32[32,32], index: 4, kind: input, shape index: {}]   ;;  %s5554_s5 = inlined_call_operand.hbm [shape: f32[1,32], index: 5, kind: input, shape index: {}]   ;;  %s5555_s6 = inlined_call_operand.vmem [shape: f32[32,128], index: 6, kind: input, shape index: {}]   ;;  %s5556_s7 = inlined_call_operand.hbm [shape: f32[1,128], index: 7, kind: input, shape index: {}]   ;;  %s5557_s8 = inlined_call_operand.hbm [shape: f32[1,32], index: 8, kind: input, shape index: {}]   ;;  %s5558_s9 = inlined_call_operand.vmem [shape: f32[32,32], index: 9, kind: input, shape index: {}]   ;;  %s5559_s10 = inlined_call_operand.hbm [shape: f32[1,32], index: 10, kind: input, shape index: {}]   ;;  %s5560_s11 = inlined_call_operand.vmem [shape: f32[32,32], index: 11, kind: input, shape index: {}]   ;;  %s5561_s12 = inlined_call_operand.hbm [shape: f32[1,32], index: 12, kind: input, shape index: {}]   ;;  %s5562_s13 = inlined_call_operand.vmem [shape: f32[32,128], index: 13, kind: input, shape index: {}]   ;;  %s5563_s14 = inlined_call_operand.hbm [shape: f32[1,128], index: 14, kind: input, shape index: {}]   ;;  %s5564_s15 = inlined_call_operand.hbm [shape: f32[1,32], index: 15, kind: input, shape index: {}]   ;;  %s5565_s16 = inlined_call_operand.hbm [shape: f32[1,32], index: 16, kind: input, shape index: {}]   ;;  %s5566_s17 = inlined_call_operand.hbm [shape: f32[1,32], index: 17, kind: input, shape index: {}]   ;;  %s5567_s18 = inlined_call_operand.hbm [shape: f32[32,128], index: 18, kind: input, shape index: {}]   ;;  %s5568_s19 = inlined_call_operand.vmem [shape: f32[1,128], index: 19, kind: input, shape index: {}]   ;;  %s5569_s20 = inlined_call_operand.vmem [shape: f32[128,32], index: 20, kind: input, shape index: {}]   ;;  %s5570_s21 = inlined_call_operand.vmem [shape: f32[1,32], index: 21, kind: input, shape index: {}]   ;;  %s5571_s22 = inlined_call_operand.hbm [shape: f32[2,8,32], index: 22, kind: output, shape index: {}]  }
   0x1   :  { %5583 = sst [smem:[#allocation33_spill]] %s5549_s0 }
   0x2   :  { %5584 = sst [smem:[#allocation34_spill]] %s5550_s1 }
   0x3   :  { %5585 = sst [smem:[#allocation35_spill]] %s5551_s2 }
   0x4   :  { %5586 = sst [smem:[#allocation36_spill]] %s5552_s3 }
   0x5   :  { %5587 = sst [smem:[#allocation37_spill]] %s5553_s4 }
   0x6   :  { %5588 = sst [smem:[#allocation38_spill]] %s5554_s5 }
   0x7   :  { %5589 = sst [smem:[#allocation39_spill]] %s5555_s6 }
   0x8   :  { %27 = vsyncpa [#allocation4], 0 }
   0x9   :  { %28 = vsyncpa [#allocation7], 0 }
   0xa   :  { %29 = vsyncpa [#allocation10], 0 }
   0xb   :  { %30 = vsyncpa [#allocation13], 0 }
   0xc   :  { %31 = vsyncpa [#allocation16], 0 }
   0xd   :  { %32 = vsyncpa [#allocation19], 0 }
   0xe   :  { %33 = vsyncpa [#allocation22], 0 }
   0xf   :  { %34 = vsyncpa [#allocation5], 0  ;;  %s4737_s3 = smov [#allocation6]   ;;  %s4738_s29 = smov [#allocation9]  }
  0x10   :  { %s52_s28 = sshll.u32 %s4737_s3, 4  ;;  %s79_s30 = sshll.u32 %s4738_s29, 4  ;;  %s53_s28 = int_to_ptr.vmem [resolvable:$true] %s52_s28  ;;  %s4876_s30 = int_to_ptr.vmem [resolvable:$true] %s79_s30 }
  0x11   :  { %s5590_s23 = sld [smem:[#allocation34_spill]] }
  0x17   :  { %s4413_s1 = scalar_lea.hbm %s5590_s23, 256 }
  0x18   :  { %p4414_p0 = scmp.ne.s32.totalorder %s5590_s23, %s4413_s1  ;;  %p4417_p1 = scmp.lt.u32.totalorder %s4413_s1, %s5590_s23 }
  0x1a   :  { %p4419_p2 = pnand %p4417_p1, %p4414_p0 }
  0x1c   :  { %4422 = shalt.err (!%p4419_p2)
}
  0x1d   :  { %s4423_s26 = scalar_lea.vmem %s53_s28, 256  ;;  %p4428_p4 = scmp.lt.s32.totalorder %s53_s28, %s53_s28 }
  0x1e   :  { %p4424_p3 = scmp.ne.s32.totalorder %s53_s28, %s4423_s26  ;;  %p4429_p5 = scmp.lt.s32.totalorder %s4423_s26, %s4423_s26 }
  0x20   :  { %p4430_p6 = por %p4429_p5, %p4428_p4 }
  0x22   :  { %p4431_p7 = pnand %p4430_p6, %p4424_p3 }
  0x24   :  { %4434 = shalt.err (!%p4431_p7)
}
  0x25   :  { %s5579_s2 = smov 128   ;;  %s5581_s27 = smov 8  }
  0x26   :  { %58 = dma.hbm_to_vmem [thread:$0]  %s5590_s23, 256, %s53_s28, [#allocation7], %s5579_s2, %s5579_s2, %s5581_s27  }
  0x27   :  { %s5591_s1 = sld [smem:[#allocation38_spill]] }
  0x2d   :  { %s4435_s5 = scalar_lea.hbm %s5591_s1, 16 }
  0x2e   :  { %p4436_p8 = scmp.ne.s32.totalorder %s5591_s1, %s4435_s5  ;;  %p4439_p9 = scmp.lt.u32.totalorder %s4435_s5, %s5591_s1 }
  0x30   :  { %p4441_p10 = pnand %p4439_p9, %p4436_p8 }
  0x32   :  { %4444 = shalt.err (!%p4441_p10)
}
  0x33   :  { %s4445_s3 = scalar_lea.vmem %s4876_s30, 16  ;;  %s4449_s28 = scalar_lea.vmem %s4876_s30, 32 }
  0x34   :  { %p4446_p11 = scmp.ne.s32.totalorder %s4876_s30, %s4445_s3  ;;  %p4450_p12 = scmp.lt.s32.totalorder %s4876_s30, %s4876_s30 }
  0x35   :  { %p4451_p13 = scmp.lt.s32.totalorder %s4449_s28, %s4445_s3 }
  0x37   :  { %p4452_p0 = por %p4451_p13, %p4450_p12 }
  0x39   :  { %p4453_p1 = pnand %p4452_p0, %p4446_p11 }
  0x3b   :  { %4456 = shalt.err (!%p4453_p1)
}
  0x3c   :  { %82 = dma.hbm_to_vmem [thread:$0]  %s5591_s1, 16, %s4876_s30, [#allocation10]  }
  0x3d   :  { %s4741_s4 = smov [#allocation12]   ;;  %s4742_s5 = smov [#allocation15]  }
  0x3e   :  { %s101_s0 = sshll.u32 %s4741_s4, 4  ;;  %s125_s24 = sshll.u32 %s4742_s5, 4  ;;  %s102_s0 = int_to_ptr.vmem [resolvable:$true] %s101_s0  ;;  %s126_s24 = int_to_ptr.vmem [resolvable:$true] %s125_s24 }
  0x3f   :  { %s4457_s26 = scalar_lea.hbm %s5557_s8, 16 }
  0x40   :  { %p4458_p2 = scmp.ne.s32.totalorder %s5557_s8, %s4457_s26  ;;  %p4461_p3 = scmp.lt.u32.totalorder %s4457_s26, %s5557_s8 }
  0x42   :  { %p4463_p4 = pnand %p4461_p3, %p4458_p2 }
  0x44   :  { %4466 = shalt.err (!%p4463_p4)
}
  0x45   :  { %s4467_s30 = scalar_lea.vmem %s102_s0, 16  ;;  %s4471_s1 = scalar_lea.vmem %s102_s0, 32 }
  0x46   :  { %p4468_p5 = scmp.ne.s32.totalorder %s102_s0, %s4467_s30  ;;  %p4472_p6 = scmp.lt.s32.totalorder %s102_s0, %s102_s0 }
  0x47   :  { %p4473_p7 = scmp.lt.s32.totalorder %s4471_s1, %s4467_s30 }
  0x49   :  { %p4474_p8 = por %p4473_p7, %p4472_p6 }
  0x4b   :  { %p4475_p9 = pnand %p4474_p8, %p4468_p5 }
  0x4d   :  { %4478 = shalt.err (!%p4475_p9)
}
  0x4e   :  { %104 = dma.hbm_to_vmem [thread:$0]  %s5557_s8, 16, %s102_s0, [#allocation13]  }
  0x4f   :  { %s4479_s5 = scalar_lea.hbm %s5561_s12, 16 }
  0x50   :  { %p4480_p10 = scmp.ne.s32.totalorder %s5561_s12, %s4479_s5  ;;  %p4483_p11 = scmp.lt.u32.totalorder %s4479_s5, %s5561_s12 }
  0x52   :  { %p4485_p12 = pnand %p4483_p11, %p4480_p10 }
  0x54   :  { %4488 = shalt.err (!%p4485_p12)
}
  0x55   :  { %s4489_s3 = scalar_lea.vmem %s126_s24, 16  ;;  %s4493_s28 = scalar_lea.vmem %s126_s24, 32 }
  0x56   :  { %p4490_p13 = scmp.ne.s32.totalorder %s126_s24, %s4489_s3  ;;  %p4494_p0 = scmp.lt.s32.totalorder %s126_s24, %s126_s24 }
  0x57   :  { %p4495_p1 = scmp.lt.s32.totalorder %s4493_s28, %s4489_s3 }
  0x59   :  { %p4496_p2 = por %p4495_p1, %p4494_p0 }
  0x5b   :  { %p4497_p3 = pnand %p4496_p2, %p4490_p13 }
  0x5d   :  { %4500 = shalt.err (!%p4497_p3)
}
  0x5e   :  { %128 = dma.hbm_to_vmem [thread:$0]  %s5561_s12, 16, %s126_s24, [#allocation16]  }
  0x5f   :  { %s4743_s30 = smov [#allocation18]   ;;  %s4744_s23 = smov [#allocation21]  }
  0x60   :  { %s147_s1 = sshll.u32 %s4743_s30, 4  ;;  %s167_s29 = sshll.u32 %s4744_s23, 4  ;;  %s148_s1 = int_to_ptr.vmem [resolvable:$true] %s147_s1  ;;  %s168_s29 = int_to_ptr.vmem [resolvable:$true] %s167_s29 }
  0x61   :  { %s4501_s5 = scalar_lea.hbm %s5564_s15, 16 }
  0x62   :  { %p4502_p4 = scmp.ne.s32.totalorder %s5564_s15, %s4501_s5  ;;  %p4505_p5 = scmp.lt.u32.totalorder %s4501_s5, %s5564_s15 }
  0x64   :  { %p4507_p6 = pnand %p4505_p5, %p4502_p4 }
  0x66   :  { %4510 = shalt.err (!%p4507_p6)
}
  0x67   :  { %s4511_s12 = scalar_lea.vmem %s148_s1, 16  ;;  %s4515_s24 = scalar_lea.vmem %s148_s1, 32 }
  0x68   :  { %p4512_p7 = scmp.ne.s32.totalorder %s148_s1, %s4511_s12  ;;  %p4516_p8 = scmp.lt.s32.totalorder %s148_s1, %s148_s1 }
  0x69   :  { %p4517_p9 = scmp.lt.s32.totalorder %s4515_s24, %s4511_s12 }
  0x6b   :  { %p4518_p10 = por %p4517_p9, %p4516_p8 }
  0x6d   :  { %p4519_p11 = pnand %p4518_p10, %p4512_p7 }
  0x6f   :  { %4522 = shalt.err (!%p4519_p11)
}
  0x70   :  { %150 = dma.hbm_to_vmem [thread:$0]  %s5564_s15, 16, %s148_s1, [#allocation19]  }
  0x71   :  { %s4523_s30 = scalar_lea.hbm %s5566_s17, 16 }
  0x72   :  { %p4524_p12 = scmp.ne.s32.totalorder %s5566_s17, %s4523_s30  ;;  %p4527_p13 = scmp.lt.u32.totalorder %s4523_s30, %s5566_s17 }
  0x74   :  { %p4529_p0 = pnand %p4527_p13, %p4524_p12 }
  0x76   :  { %4532 = shalt.err (!%p4529_p0)
}
  0x77   :  { %s4533_s27 = scalar_lea.vmem %s168_s29, 16  ;;  %s4537_s6 = scalar_lea.vmem %s168_s29, 32 }
  0x78   :  { %p4534_p1 = scmp.ne.s32.totalorder %s168_s29, %s4533_s27  ;;  %p4538_p2 = scmp.lt.s32.totalorder %s168_s29, %s168_s29 }
  0x79   :  { %p4539_p3 = scmp.lt.s32.totalorder %s4537_s6, %s4533_s27 }
  0x7b   :  { %p4540_p4 = por %p4539_p3, %p4538_p2 }
  0x7d   :  { %p4541_p5 = pnand %p4540_p4, %p4534_p1 }
  0x7f   :  { %4544 = shalt.err (!%p4541_p5)
}
  0x80   :  { %170 = dma.hbm_to_vmem [thread:$0]  %s5566_s17, 16, %s168_s29, [#allocation22]  }
  0x81   :  { %s4745_s25 = smov [#allocation3]   ;;  %s4746_s12 = smov [#allocation8]  }
  0x82   :  { %s40_s26 = sshll.u32 %s4745_s25, 4  ;;  %s67_s24 = sshll.u32 %s4746_s12, 4  ;;  %s41_s26 = int_to_ptr.vmem [resolvable:$true] %s40_s26  ;;  %s68_s24 = int_to_ptr.vmem [resolvable:$true] %s67_s24 }
  0x83   :  { %s5592_s8 = sld [smem:[#allocation33_spill]] }
  0x89   :  { %s4545_s0 = scalar_lea.hbm %s5592_s8, 256 }
  0x8a   :  { %p4546_p6 = scmp.ne.s32.totalorder %s5592_s8, %s4545_s0  ;;  %p4549_p7 = scmp.lt.u32.totalorder %s4545_s0, %s5592_s8 }
  0x8c   :  { %p4551_p8 = pnand %p4549_p7, %p4546_p6 }
  0x8e   :  { %4554 = shalt.err (!%p4551_p8)
}
  0x8f   :  { %s4555_s17 = scalar_lea.vmem %s41_s26, 256  ;;  %p4560_p10 = scmp.lt.s32.totalorder %s41_s26, %s41_s26 }
  0x90   :  { %p4556_p9 = scmp.ne.s32.totalorder %s41_s26, %s4555_s17  ;;  %p4561_p11 = scmp.lt.s32.totalorder %s4555_s17, %s4555_s17 }
  0x92   :  { %p4562_p12 = por %p4561_p11, %p4560_p10 }
  0x94   :  { %p4563_p13 = pnand %p4562_p12, %p4556_p9 }
  0x96   :  { %4566 = shalt.err (!%p4563_p13)
}
  0x97   :  { %s5593_s29 = smov 8   ;;  %s5594_s5 = smov 128  }
  0x98   :  { %46 = dma.hbm_to_vmem [thread:$0]  %s5592_s8, 256, %s41_s26, [#allocation4], %s5594_s5, %s5594_s5, %s5593_s29  }
  0x99   :  { %s5595_s25 = sld [smem:[#allocation36_spill]] }
  0x9f   :  { %s4567_s12 = scalar_lea.hbm %s5595_s25, 16 }
  0xa0   :  { %p4568_p0 = scmp.ne.s32.totalorder %s5595_s25, %s4567_s12  ;;  %p4571_p1 = scmp.lt.u32.totalorder %s4567_s12, %s5595_s25 }
  0xa2   :  { %p4573_p2 = pnand %p4571_p1, %p4568_p0 }
  0xa4   :  { %4576 = shalt.err (!%p4573_p2)
}
  0xa5   :  { %s4577_s23 = scalar_lea.vmem %s68_s24, 16  ;;  %s4581_s2 = scalar_lea.vmem %s68_s24, 32 }
  0xa6   :  { %p4578_p3 = scmp.ne.s32.totalorder %s68_s24, %s4577_s23  ;;  %p4582_p4 = scmp.lt.s32.totalorder %s68_s24, %s68_s24 }
  0xa7   :  { %p4583_p5 = scmp.lt.s32.totalorder %s4581_s2, %s4577_s23 }
  0xa9   :  { %p4584_p6 = por %p4583_p5, %p4582_p4 }
  0xab   :  { %p4585_p7 = pnand %p4584_p6, %p4578_p3 }
  0xad   :  { %4588 = shalt.err (!%p4585_p7)
}
  0xae   :  { %70 = dma.hbm_to_vmem [thread:$0]  %s5595_s25, 16, %s68_s24, [#allocation7]  }
  0xaf   :  { %s4747_s4 = smov [#allocation11]   ;;  %s4748_s27 = smov [#allocation14]  }
  0xb0   :  { %s91_s17 = sshll.u32 %s4747_s4, 4  ;;  %s113_s6 = sshll.u32 %s4748_s27, 4  ;;  %s92_s17 = int_to_ptr.vmem [resolvable:$true] %s91_s17  ;;  %s114_s6 = int_to_ptr.vmem [resolvable:$true] %s113_s6 }
  0xb1   :  { %s4589_s12 = scalar_lea.hbm %s5556_s7, 16 }
  0xb2   :  { %p4590_p8 = scmp.ne.s32.totalorder %s5556_s7, %s4589_s12  ;;  %p4593_p9 = scmp.lt.u32.totalorder %s4589_s12, %s5556_s7 }
  0xb4   :  { %p4595_p10 = pnand %p4593_p9, %p4590_p8 }
  0xb6   :  { %4598 = shalt.err (!%p4595_p10)
}
  0xb7   :  { %s4599_s24 = scalar_lea.vmem %s92_s17, 16  ;;  %s4603_s25 = scalar_lea.vmem %s92_s17, 32 }
  0xb8   :  { %p4600_p11 = scmp.ne.s32.totalorder %s92_s17, %s4599_s24  ;;  %p4604_p12 = scmp.lt.s32.totalorder %s92_s17, %s92_s17 }
  0xb9   :  { %p4605_p13 = scmp.lt.s32.totalorder %s4603_s25, %s4599_s24 }
  0xbb   :  { %p4606_p0 = por %p4605_p13, %p4604_p12 }
  0xbd   :  { %p4607_p1 = pnand %p4606_p0, %p4600_p11 }
  0xbf   :  { %4610 = shalt.err (!%p4607_p1)
}
  0xc0   :  { %94 = dma.hbm_to_vmem [thread:$0]  %s5556_s7, 16, %s92_s17, [#allocation10]  }
  0xc1   :  { %s4611_s4 = scalar_lea.hbm %s5559_s10, 16 }
  0xc2   :  { %p4612_p2 = scmp.ne.s32.totalorder %s5559_s10, %s4611_s4  ;;  %p4615_p3 = scmp.lt.u32.totalorder %s4611_s4, %s5559_s10 }
  0xc4   :  { %p4617_p4 = pnand %p4615_p3, %p4612_p2 }
  0xc6   :  { %4620 = shalt.err (!%p4617_p4)
}
  0xc7   :  { %s4621_s3 = scalar_lea.vmem %s114_s6, 16  ;;  %s4625_s28 = scalar_lea.vmem %s114_s6, 32 }
  0xc8   :  { %p4622_p5 = scmp.ne.s32.totalorder %s114_s6, %s4621_s3  ;;  %p4626_p6 = scmp.lt.s32.totalorder %s114_s6, %s114_s6 }
  0xc9   :  { %p4627_p7 = scmp.lt.s32.totalorder %s4625_s28, %s4621_s3 }
  0xcb   :  { %p4628_p8 = por %p4627_p7, %p4626_p6 }
  0xcd   :  { %p4629_p9 = pnand %p4628_p8, %p4622_p5 }
  0xcf   :  { %4632 = shalt.err (!%p4629_p9)
}
  0xd0   :  { %116 = dma.hbm_to_vmem [thread:$0]  %s5559_s10, 16, %s114_s6, [#allocation13]  }
  0xd1   :  { %s4749_s0 = smov [#allocation17]   ;;  %s4750_s24 = smov [#allocation20]  }
  0xd2   :  { %s137_s30 = sshll.u32 %s4749_s0, 4  ;;  %s157_s25 = sshll.u32 %s4750_s24, 4  ;;  %s138_s30 = int_to_ptr.vmem [resolvable:$true] %s137_s30  ;;  %s158_s25 = int_to_ptr.vmem [resolvable:$true] %s157_s25 }
  0xd3   :  { %s4633_s26 = scalar_lea.hbm %s5563_s14, 16 }
  0xd4   :  { %p4634_p10 = scmp.ne.s32.totalorder %s5563_s14, %s4633_s26  ;;  %p4637_p11 = scmp.lt.u32.totalorder %s4633_s26, %s5563_s14 }
  0xd6   :  { %p4639_p12 = pnand %p4637_p11, %p4634_p10 }
  0xd8   :  { %4642 = shalt.err (!%p4639_p12)
}
  0xd9   :  { %s4643_s10 = scalar_lea.vmem %s138_s30, 16  ;;  %s4647_s6 = scalar_lea.vmem %s138_s30, 32 }
  0xda   :  { %p4644_p13 = scmp.ne.s32.totalorder %s138_s30, %s4643_s10  ;;  %p4648_p0 = scmp.lt.s32.totalorder %s138_s30, %s138_s30 }
  0xdb   :  { %p4649_p1 = scmp.lt.s32.totalorder %s4647_s6, %s4643_s10 }
  0xdd   :  { %p4650_p2 = por %p4649_p1, %p4648_p0 }
  0xdf   :  { %p4651_p3 = pnand %p4650_p2, %p4644_p13 }
  0xe1   :  { %4654 = shalt.err (!%p4651_p3)
}
  0xe2   :  { %140 = dma.hbm_to_vmem [thread:$0]  %s5563_s14, 16, %s138_s30, [#allocation16]  }
  0xe3   :  { %s4655_s7 = scalar_lea.hbm %s5565_s16, 16 }
  0xe4   :  { %p4656_p4 = scmp.ne.s32.totalorder %s5565_s16, %s4655_s7  ;;  %p4659_p5 = scmp.lt.u32.totalorder %s4655_s7, %s5565_s16 }
  0xe6   :  { %p4661_p6 = pnand %p4659_p5, %p4656_p4 }
  0xe8   :  { %4664 = shalt.err (!%p4661_p6)
}
  0xe9   :  { %s4665_s2 = scalar_lea.vmem %s158_s25, 16  ;;  %s4669_s26 = scalar_lea.vmem %s158_s25, 32 }
  0xea   :  { %p4666_p7 = scmp.ne.s32.totalorder %s158_s25, %s4665_s2  ;;  %p4670_p8 = scmp.lt.s32.totalorder %s158_s25, %s158_s25 }
  0xeb   :  { %p4671_p9 = scmp.lt.s32.totalorder %s4669_s26, %s4665_s2 }
  0xed   :  { %p4672_p10 = por %p4671_p9, %p4670_p8 }
  0xef   :  { %p4673_p11 = pnand %p4672_p10, %p4666_p7 }
  0xf1   :  { %4676 = shalt.err (!%p4673_p11)
}
  0xf2   :  { %160 = dma.hbm_to_vmem [thread:$0]  %s5565_s16, 16, %s158_s25, [#allocation19]  }
  0xf3   :  { %s4751_s8 = smov [#allocation23]   ;;  %s4677_s10 = scalar_lea.hbm %s5567_s18, 512 }
  0xf4   :  { %s176_s4 = sshll.u32 %s4751_s8, 4  ;;  %p4678_p12 = scmp.ne.s32.totalorder %s5567_s18, %s4677_s10  ;;  %s177_s4 = int_to_ptr.vmem [resolvable:$true] %s176_s4 }
  0xf5   :  { %p4681_p13 = scmp.lt.u32.totalorder %s4677_s10, %s5567_s18 }
  0xf7   :  { %p4683_p0 = pnand %p4681_p13, %p4678_p12 }
  0xf9   :  { %4686 = shalt.err (!%p4683_p0)
}
  0xfa   :  { %s4687_s28 = scalar_lea.vmem %s177_s4, 512  ;;  %p4692_p2 = scmp.lt.s32.totalorder %s177_s4, %s177_s4 }
  0xfb   :  { %p4688_p1 = scmp.ne.s32.totalorder %s177_s4, %s4687_s28  ;;  %p4693_p3 = scmp.lt.s32.totalorder %s4687_s28, %s4687_s28 }
  0xfd   :  { %p4694_p4 = por %p4693_p3, %p4692_p2 }
  0xff   :  { %p4695_p5 = pnand %p4694_p4, %p4688_p1 }
 0x101   :  { %4698 = shalt.err (!%p4695_p5)
}
 0x102   :  { %182 = dma.hbm_to_vmem [thread:$0]  %s5567_s18, 512, %s177_s4, [#allocation22], %s5594_s5, %s5594_s5, %s5593_s29  }
 0x103   :  { %4721 = dma.done.wait [#allocation4], 256  }
 0x104   :  { %4722 = vsyncadd [#allocation4], 4294967040 }
 0x105   :  { %4723 = dma.done.wait [#allocation7], 272  }
 0x106   :  { %4724 = vsyncadd [#allocation7], 4294967024 }
 0x107   :  { %4725 = dma.done.wait [#allocation10], 32  }
 0x108   :  { %4726 = vsyncadd [#allocation10], 4294967264 }
 0x109   :  { %4727 = dma.done.wait [#allocation13], 32  }
 0x10a   :  { %4728 = vsyncadd [#allocation13], 4294967264 }
 0x10b   :  { %4729 = dma.done.wait [#allocation16], 32  }
 0x10c   :  { %4730 = vsyncadd [#allocation16], 4294967264 }
 0x10d   :  { %4731 = dma.done.wait [#allocation19], 32  }
 0x10e   :  { %4732 = vsyncadd [#allocation19], 4294967264 }
 0x10f   :  { %4733 = dma.done.wait [#allocation22], 528  }
 0x110   :  { %4734 = vsyncadd [#allocation22], 4294966768  ;;  %vm245_vm0 = vcmask 261120   ;;  %s5596_s0 = sld [smem:[#allocation35_spill]]  ;;  %v5061_v5 = vld [vmem:[#allocation3] sm:$0xff]  ;;  %s5597_s4 = sld [smem:[#allocation37_spill]] }
 0x111   :  { %3961 = vmatprep.mubr.msk.f32.mxu0 %vm245_vm0, %v5061_v5  ;;  %v5077_v12 = vld [vmem:[#allocation3 + $0x8] sm:$0xff]  ;;  %s5598_s16 = sld [smem:[#allocation39_spill]]  ;;  %v4752_v20 = vmov 0.0   ;;  %vm4753_vm1 = vmmov 0   ;;  %v3755_v21 = vld [vmem:[#allocation8] ss:$0 sm:$0xff] }
 0x112   :  { %3991 = vmatprep.subr.mxu1 %v4752_v20  ;;  %3993 = vmatprep.mubr.msk.f32.mxu1 %vm4753_vm1, %v4752_v20  ;;  %v3758_v25 = vld [vmem:[#allocation9] ss:$0 sm:$0xff]  ;;  %vm500_vm2 = vcmask 64512   ;;  %s4754_s23 = smov 120   ;;  %v3761_v31 = vld [vmem:[#allocation11] ss:$0 sm:$0xff] }
 0x113   :  { %s4755_s2 = smov 96   ;;  %s4756_s26 = smov 112  }
 0x114   :  { %s4757_s14 = smov 104   ;;  %s4758_s30 = smov 64  }
 0x115   :  { %s4759_s8 = smov 32  }
 0x116   :  { %v234_v0 = vld [vmem:[%s5596_s0] sm:$0xff]  ;;  %v235_v1 = vld [vmem:[%s5596_s0 + $0x8] sm:$0xff]  ;;  %v236_v2 = vld [vmem:[%s5596_s0 + $0x10] sm:$0xff] }
 0x117   :  { %v4225_v3 = vpack.c.bf16 %v235_v1, %v234_v0  ;;  %v237_v4 = vld [vmem:[%s5596_s0 + $0x18] sm:$0xff]  ;;  %v327_v7 = vld [vmem:[%s5597_s4] sm:$0xff]  ;;  %v328_v8 = vld [vmem:[%s5597_s4 + $0x8] sm:$0xff] }
 0x118   :  { %v4229_v6 = vpack.c.bf16 %v237_v4, %v236_v2  ;;  %v4233_v9 = vpack.c.bf16 %v328_v8, %v327_v7  ;;  %v329_v10 = vld [vmem:[%s5597_s4 + $0x10] sm:$0xff]  ;;  %v330_v11 = vld [vmem:[%s5597_s4 + $0x18] sm:$0xff]  ;;  %v413_v14 = vld [vmem:[%s5598_s16] sm:$0xff] }
 0x119   :  { %4226 = vmatprep.subr.bf16.mxu0 %v4225_v3  ;;  %v4237_v13 = vpack.c.bf16 %v330_v11, %v329_v10  ;;  %v414_v15 = vld [vmem:[%s5598_s16 + $0x8] sm:$0xff]  ;;  %v415_v17 = vld [vmem:[%s5598_s16 + $0x10] sm:$0xff]  ;;  %v416_v18 = vld [vmem:[%s5598_s16 + $0x18] sm:$0xff] }
 0x11a   :  { %4228 = vmatpush3.bf16.msra.mxu0 %v4225_v3  ;;  %v4241_v16 = vpack.c.bf16 %v414_v15, %v413_v14  ;;  %v4245_v19 = vpack.c.bf16 %v416_v18, %v415_v17 }
 0x11b   :  { %4230 = vmatprep.subr.bf16.mxu0 %v4229_v6 }
 0x11e   :  { %4232 = vmatpush3.bf16.msra.mxu0 %v4229_v6 }
 0x11f   :  { %4234 = vmatprep.subr.bf16.mxu0 %v4233_v9 }
 0x121   :  { %3962 = vmatmul.mubr.msk.f32.vlgmr.msra.gmra.mrb[0].mxu0 %vm245_vm0, %v5077_v12 }
 0x122   :  { %4236 = vmatpush3.bf16.msra.mxu0 %v4233_v9  ;;  %3972 = vmatprep.mubr.msk.f32.mxu0 %vm245_vm0, %v5061_v5 }
 0x123   :  { %4238 = vmatprep.subr.bf16.mxu0 %v4237_v13 }
 0x126   :  { %4240 = vmatpush3.bf16.msra.mxu0 %v4237_v13 }
 0x127   :  { %4242 = vmatprep.subr.bf16.mxu0 %v4241_v16 }
 0x129   :  { %3973 = vmatmul.mubr.msk.f32.vlgmr.msra.gmra.mrb[2].mxu0 %vm245_vm0, %v5077_v12 }
 0x12a   :  { %4244 = vmatpush3.bf16.msra.mxu0 %v4241_v16  ;;  %3983 = vmatprep.mubr.msk.f32.mxu0 %vm245_vm0, %v5061_v5 }
 0x12b   :  { %4246 = vmatprep.subr.bf16.mxu0 %v4245_v19 }
 0x12e   :  { %4248 = vmatpush3.bf16.msra.mxu0 %v4245_v19 }
 0x12f   :  { %3986 = vmatprep.subr.mxu0 %v4752_v20 }
 0x131   :  { %3984 = vmatmul.mubr.msk.f32.vlgmr.msra.gmra.mrb[4].mxu0 %vm245_vm0, %v5077_v12 }
 0x132   :  { %3988 = vmatprep.mubr.msk.f32.mxu0 %vm4753_vm1, %v4752_v20 }
 0x1f4   :  { %v3963_v22 = vpop.f32.mrb[0].mxu0 }
 0x1f5   :  { %v5107_v23 = vadd.f32 %v3963_v22, %v3755_v21  ;;  %v318_v24 = vpop.f32.mrb[1].mxu0 }
 0x1f6   :  { %v319_v30 = vadd.f32 %v3755_v21, %v318_v24 }
 0x1fc   :  { %v3974_v26 = vpop.f32.mrb[2].mxu0 }
 0x1fd   :  { %v5109_v27 = vadd.f32 %v3974_v26, %v3758_v25  ;;  %v404_v28 = vpop.f32.mrb[3].mxu0 }
 0x1fe   :  { %v405_v29 = vadd.f32 %v3758_v25, %v404_v28 }
 0x200   :  { %590 = vrot.lane.b32.xlu0 %v405_v29, %s4754_s23  ;;  %3987 = vmatpush3.xpose.msk.msra.mxu0 %vm500_vm2, %v405_v29 }
 0x201   :  { %3996 = vmatprep.subr.mxu0 %v4752_v20 }
 0x203   :  { %3989 = vmatmul.mubr.msk.f32.vlgmr.msra.gmra.mrb[6].mxu0 %vm500_vm2, %v319_v30 }
 0x204   :  { %v3985_v32 = vpop.f32.mrb[4].mxu0  ;;  %588 = vrot.lane.b32.xlu0 %v319_v30, %s4754_s23  ;;  %3998 = vmatprep.mubr.msk.f32.mxu0 %vm4753_vm1, %v4752_v20 }
 0x205   :  { %v5118_v33 = vadd.f32 %v3985_v32, %v3761_v31  ;;  %v490_v34 = vpop.f32.mrb[5].mxu0 }
 0x206   :  { %v5120_v35 = vadd.f32 %v3761_v31, %v490_v34 }
 0x208   :  { %678 = vrot.lane.b32.xlu0 %v5120_v35, %s4755_s2 }
 0x20c   :  { %827 = vrot.lane.b32.xlu0 %v319_v30, %s4756_s26 }
 0x210   :  { %995 = vrot.lane.b32.xlu0 %v405_v29, %s4757_s14 }
 0x214   :  { %993 = vrot.lane.b32.xlu0 %v319_v30, %s4757_s14 }
 0x272   :  { %v591_v36 = vpop.permute.xlu0 %590 }
 0x273   :  { %3992 = vmatpush3.xpose.msk.msra.mxu1 %vm500_vm2, %v591_v36 }
 0x274   :  { %4001 = vmatprep.subr.mxu1 %v4752_v20 }
 0x276   :  { %v589_v37 = vpop.permute.xlu0 %588 }
 0x277   :  { %3994 = vmatmul.mubr.msk.f32.vlgmr.msra.gmra.mrb[0].mxu1 %vm500_vm2, %v589_v37 }
 0x278   :  { %4002 = vmatpush3.msra.mxu1 %v5120_v35  ;;  %4003 = vmatprep.mubr.msk.f32.mxu1 %vm4753_vm1, %v4752_v20 }
 0x279   :  { %4011 = vmatprep.subr.mxu1 %v4752_v20 }
 0x27a   :  { %v679_v38 = vpop.permute.xlu0 %678 }
 0x27b   :  { %3997 = vmatpush3.msra.mxu0 %v679_v38 }
 0x27c   :  { %4006 = vmatprep.subr.mxu0 %v4752_v20 }
 0x27e   :  { %v828_v51 = vpop.permute.xlu0 %827 }
 0x282   :  { %v996_v55 = vpop.permute.xlu0 %995 }
 0x286   :  { %v994_v56 = vpop.permute.xlu0 %993 }
 0x2d6   :  { %v573_v39 = vpop.f32.mrb[6].mxu0 }
 0x2d7   :  { %v3990_v40 = vpop.f32.mrb[7].mxu0  ;;  %v577_v41 = vsel %vm500_vm2, %v573_v39, -inf }
 0x2d8   :  { %578 = vmax.xlane.f32.xlu0 %v577_v41 }
 0x34a   :  { %v662_v42 = vpop.f32.mrb[0].mxu1 }
 0x34b   :  { %v3995_v43 = vpop.f32.mrb[1].mxu1  ;;  %v666_v44 = vsel %vm500_vm2, %v662_v42, -inf }
 0x34c   :  { %667 = vmax.xlane.f32.xlu1 %v666_v44  ;;  %v5197_v43 = vld [vmem:[#allocation12] ss:$0 sm:$0xff] }
 0x365   :  { %v579_v57 = vpop.xlane.xlu0 %578 }
 0x366   :  { %v580_v58 = vsub.f32 %v573_v39, %v579_v57 }
 0x368   :  { %v581_v59 = vmul.f32 1.442695, %v580_v58 }
 0x3d9   :  { %v668_v45 = vpop.xlane.xlu1 %667 }
 0x3da   :  { %v669_v46 = vsub.f32 %v662_v42, %v668_v45 }
 0x3dc   :  { %v670_v47 = vmul.f32 1.442695, %v669_v46 }
 0x3de   :  { %4337 = vpow2.f32 %v670_v47 }
 0x3e8   :  { %v4338_v48 = vpop.eup %4337 }
 0x3e9   :  { %v672_v49 = vsel %vm500_vm2, %v4338_v48, 0.0 }
 0x3ea   :  { %673 = vadd.xlane.f32.xlu1 %v672_v49 }
 0x3fb   :  { %829 = vrot.lane.b32.xlu1 %v405_v29, %s4756_s26 }
 0x477   :  { %v674_v50 = vpop.xlane.xlu1 %673 }
 0x478   :  { %4339 = vrcp.f32 %v674_v50 }
 0x479   :  { %4341 = vpow2.f32 %v581_v59 }
 0x47b   :  { %v830_v54 = vpop.permute.xlu1 %829 }
 0x482   :  { %v4340_v52 = vpop.eup %4339 }
 0x483   :  { %v676_v53 = vmul.f32 %v4340_v52, %v4338_v48  ;;  %v4342_v4 = vpop.eup %4341 }
 0x484   :  { %v583_v8 = vsel %vm500_vm2, %v4342_v4, 0.0 }
 0x485   :  { %3999 = vmatmul.mubr.msk.f32.vlgmr.msra.gmra.mrb[8].mxu0 %vm500_vm2, %v676_v53 }
 0x486   :  { %4007 = vmatpush3.xpose.msk.msra.mxu0 %vm500_vm2, %v830_v54  ;;  %4008 = vmatprep.mubr.msk.f32.mxu0 %vm4753_vm1, %v4752_v20 }
 0x487   :  { %4016 = vmatprep.subr.mxu0 %v4752_v20 }
 0x489   :  { %4009 = vmatmul.mubr.msk.f32.vlgmr.msra.gmra.mrb[10].mxu0 %vm500_vm2, %v828_v51 }
 0x48a   :  { %4017 = vmatpush3.xpose.msk.msra.mxu0 %vm500_vm2, %v996_v55  ;;  %4018 = vmatprep.mubr.msk.f32.mxu0 %vm4753_vm1, %v4752_v20 }
 0x48b   :  { %4026 = vmatprep.subr.mxu0 %v4752_v20 }
 0x48d   :  { %4019 = vmatmul.mubr.msk.f32.vlgmr.msra.gmra.mrb[12].mxu0 %vm500_vm2, %v994_v56 }
 0x48e   :  { %4027 = vmatpush3.xpose.msk.msra.mxu0 %vm500_vm2, %v5109_v27  ;;  %4028 = vmatprep.mubr.msk.f32.mxu0 %vm4753_vm1, %v4752_v20 }
 0x48f   :  { %4036 = vmatprep.subr.mxu0 %v4752_v20 }
 0x491   :  { %4029 = vmatmul.mubr.msk.f32.vlgmr.msra.gmra.mrb[14].mxu0 %vm500_vm2, %v5107_v23 }
 0x492   :  { %4038 = vmatprep.mubr.msk.f32.mxu0 %vm4753_vm1, %v4752_v20 }
 0x558   :  { %v5159_v60 = vpop.f32.mrb[8].mxu0 }
 0x559   :  { %v4000_v61 = vpop.f32.mrb[9].mxu0 }
 0x55c   :  { %v901_v62 = vpop.f32.mrb[10].mxu0 }
 0x55d   :  { %v4010_v63 = vpop.f32.mrb[11].mxu0  ;;  %v905_v0 = vsel %vm500_vm2, %v901_v62, -inf }
 0x55e   :  { %906 = vmax.xlane.f32.xlu1 %v905_v0 }
 0x560   :  { %v1067_v1 = vpop.f32.mrb[12].mxu0 }
 0x561   :  { %v4020_v2 = vpop.f32.mrb[13].mxu0  ;;  %v1071_v3 = vsel %vm500_vm2, %v1067_v1, -inf }
 0x562   :  { %1072 = vmax.xlane.f32.xlu0 %v1071_v3 }
 0x564   :  { %v5163_v6 = vpop.f32.mrb[14].mxu0 }
 0x565   :  { %v4030_v7 = vpop.f32.mrb[15].mxu0  ;;  %v1242_v57 = vsel %vm500_vm2, %v5163_v6, -inf }
 0x566   :  { %584 = vadd.xlane.f32.xlu0 %v583_v8 }
 0x56f   :  { %916 = vrot.lane.b32.xlu1 %v5120_v35, %s4758_s30 }
 0x5eb   :  { %v907_v9 = vpop.xlane.xlu1 %906 }
 0x5ec   :  { %v908_v10 = vsub.f32 %v901_v62, %v907_v9 }
 0x5ee   :  { %v909_v11 = vmul.f32 1.442695, %v908_v10 }
 0x5ef   :  { %v1073_v13 = vpop.xlane.xlu0 %1072  ;;  %v917_v25 = vpop.permute.xlu1 %916 }
 0x5f0   :  { %4343 = vpow2.f32 %v909_v11  ;;  %v1074_v14 = vsub.f32 %v1067_v1, %v1073_v13 }
 0x5f2   :  { %v1075_v15 = vmul.f32 1.442695, %v1074_v14 }
 0x5f3   :  { %v585_v16 = vpop.xlane.xlu0 %584 }
 0x5f4   :  { %4345 = vpow2.f32 %v1075_v15 }
 0x5f5   :  { %4347 = vrcp.f32 %v585_v16 }
 0x5fa   :  { %v4344_v17 = vpop.eup %4343 }
 0x5fb   :  { %v911_v18 = vsel %vm500_vm2, %v4344_v17, 0.0 }
 0x5fc   :  { %912 = vadd.xlane.f32.xlu1 %v911_v18 }
 0x5fe   :  { %v4346_v19 = vpop.eup %4345 }
 0x5ff   :  { %v4348_v21 = vpop.eup %4347  ;;  %v1077_v22 = vsel %vm500_vm2, %v4346_v19, 0.0 }
 0x600   :  { %v587_v24 = vmul.f32 %v4348_v21, %v4342_v4  ;;  %1078 = vadd.xlane.f32.xlu0 %v1077_v22 }
 0x602   :  { %4004 = vmatmul.mubr.msk.f32.vlgmr.msra.gmra.mrb[2].mxu1 %vm500_vm2, %v587_v24 }
 0x603   :  { %4012 = vmatpush3.msra.mxu1 %v917_v25  ;;  %4013 = vmatprep.mubr.msk.f32.mxu1 %vm4753_vm1, %v4752_v20 }
 0x604   :  { %4021 = vmatprep.subr.mxu1 %v4752_v20 }
 0x60d   :  { %1255 = vrot.lane.b32.xlu1 %v5109_v27, %s4754_s23 }
 0x611   :  { %1253 = vrot.lane.b32.xlu1 %v5107_v23, %s4754_s23 }
 0x615   :  { %1494 = vrot.lane.b32.xlu1 %v5109_v27, %s4756_s26 }
 0x616   :  { %1082 = vrot.lane.b32.xlu0 %v5120_v35, %s4759_s8 }
 0x689   :  { %v913_v26 = vpop.xlane.xlu1 %912 }
 0x68a   :  { %4349 = vrcp.f32 %v913_v26 }
 0x68d   :  { %v1079_v28 = vpop.xlane.xlu0 %1078  ;;  %v1256_v36 = vpop.permute.xlu1 %1255 }
 0x68e   :  { %4351 = vrcp.f32 %v1079_v28 }
 0x691   :  { %v1083_v31 = vpop.permute.xlu0 %1082  ;;  %v1254_v35 = vpop.permute.xlu1 %1253 }
 0x694   :  { %v4350_v29 = vpop.eup %4349 }
 0x695   :  { %v915_v30 = vmul.f32 %v4350_v29, %v4344_v17 }
 0x697   :  { %4014 = vmatmul.mubr.msk.f32.vlgmr.msra.gmra.mrb[4].mxu1 %vm500_vm2, %v915_v30 }
 0x698   :  { %v4352_v32 = vpop.eup %4351  ;;  %4022 = vmatpush3.msra.mxu1 %v1083_v31  ;;  %4023 = vmatprep.mubr.msk.f32.mxu1 %vm4753_vm1, %v4752_v20 }
 0x699   :  { %v1081_v34 = vmul.f32 %v4352_v32, %v4346_v19  ;;  %4031 = vmatprep.subr.mxu1 %v4752_v20 }
 0x69b   :  { %4024 = vmatmul.mubr.msk.f32.vlgmr.msra.gmra.mrb[6].mxu1 %vm500_vm2, %v1081_v34 }
 0x69c   :  { %4033 = vmatprep.mubr.msk.f32.mxu1 %vm4753_vm1, %v4752_v20 }
 0x69f   :  { %4032 = vmatpush3.xpose.msk.msra.mxu1 %vm500_vm2, %v1256_v36 }
 0x6a0   :  { %4041 = vmatprep.subr.mxu1 %v4752_v20 }
 0x6a2   :  { %4034 = vmatmul.mubr.msk.f32.vlgmr.msra.gmra.mrb[8].mxu1 %vm500_vm2, %v1254_v35 }
 0x6a3   :  { %4042 = vmatpush3.msra.mxu1 %v5118_v33  ;;  %4043 = vmatprep.mubr.msk.f32.mxu1 %vm4753_vm1, %v4752_v20 }
 0x6a4   :  { %4051 = vmatprep.subr.mxu1 %v4752_v20 }
 0x6d5   :  { %v823_v37 = vpop.f32.mrb[2].mxu1 }
 0x6d6   :  { %v824_v38 = vadd.f32 %v823_v37, %v5159_v60  ;;  %v4005_v39 = vpop.f32.mrb[3].mxu1 }
 0x76a   :  { %v988_v40 = vpop.f32.mrb[4].mxu1 }
 0x76b   :  { %v992_v41 = vadd.f32 %v988_v40, %v824_v38  ;;  %v4015_v42 = vpop.f32.mrb[5].mxu1 }
 0x76e   :  { %v1154_v44 = vpop.f32.mrb[6].mxu1 }
 0x76f   :  { %v1158_v45 = vadd.f32 %v1154_v44, %v992_v41  ;;  %v4025_v46 = vpop.f32.mrb[7].mxu1 }
 0x771   :  { %v1165_v47 = vadd.f32 %v5197_v43, %v1158_v45 }
 0x773   :  { %1825 = vst.msk [vmem:[#allocation2] sm:$0xff] %vm245_vm0, %v1165_v47 }
 0x775   :  { %v1327_v48 = vpop.f32.mrb[8].mxu1 }
 0x776   :  { %v4035_v49 = vpop.f32.mrb[9].mxu1  ;;  %v1331_v50 = vsel %vm500_vm2, %v1327_v48, -inf }
 0x777   :  { %1332 = vmax.xlane.f32.xlu0 %v1331_v50 }
 0x77a   :  { %v1827_v34 = vld [vmem:[#allocation2] sm:$0xff] }
 0x77b   :  { %v1829_v36 = vadd.f32 %v1827_v34, %v5061_v5 }
 0x77d   :  { %v1831_v35 = vsel %vm245_vm0, %v1829_v36, 0.0 }
 0x78d   :  { %1343 = vrot.lane.b32.xlu0 %v5118_v33, %s4755_s2 }
 0x791   :  { %1492 = vrot.lane.b32.xlu0 %v5107_v23, %s4756_s26 }
 0x795   :  { %1658 = vrot.lane.b32.xlu0 %v5107_v23, %s4757_s14  ;;  %v1495_v23 = vpop.permute.xlu1 %1494 }
 0x804   :  { %v1333_v51 = vpop.xlane.xlu0 %1332 }
 0x805   :  { %v1334_v52 = vsub.f32 %v1327_v48, %v1333_v51 }
 0x807   :  { %v1335_v53 = vmul.f32 1.442695, %v1334_v52 }
 0x808   :  { %v1344_v54 = vpop.permute.xlu0 %1343 }
 0x809   :  { %4353 = vpow2.f32 %v1335_v53  ;;  %4037 = vmatpush3.msra.mxu0 %v1344_v54 }
 0x80a   :  { %4046 = vmatprep.subr.mxu0 %v4752_v20 }
 0x80c   :  { %v1493_v61 = vpop.permute.xlu0 %1492 }
 0x810   :  { %v1659_v62 = vpop.permute.xlu0 %1658 }
 0x813   :  { %v4354_v55 = vpop.eup %4353 }
 0x814   :  { %v1337_v56 = vsel %vm500_vm2, %v4354_v55, 0.0 }
 0x815   :  { %1338 = vadd.xlane.f32.xlu1 %v1337_v56 }
 0x826   :  { %1660 = vrot.lane.b32.xlu1 %v5109_v27, %s4757_s14 }
 0x84a   :  { %1243 = vmax.xlane.f32.xlu1 %v1242_v57 }
 0x8a2   :  { %v1339_v58 = vpop.xlane.xlu1 %1338 }
 0x8a3   :  { %4355 = vrcp.f32 %v1339_v58 }
 0x8a6   :  { %v1661_v27 = vpop.permute.xlu1 %1660 }
 0x8ad   :  { %v4356_v59 = vpop.eup %4355 }
 0x8ae   :  { %v1341_v60 = vmul.f32 %v4356_v59, %v4354_v55 }
 0x8b0   :  { %4039 = vmatmul.mubr.msk.f32.vlgmr.msra.gmra.mrb[16].mxu0 %vm500_vm2, %v1341_v60 }
 0x8b1   :  { %4047 = vmatpush3.xpose.msk.msra.mxu0 %vm500_vm2, %v1495_v23  ;;  %4048 = vmatprep.mubr.msk.f32.mxu0 %vm4753_vm1, %v4752_v20 }
 0x8b2   :  { %4056 = vmatprep.subr.mxu0 %v4752_v20 }
 0x8b4   :  { %4049 = vmatmul.mubr.msk.f32.vlgmr.msra.gmra.mrb[18].mxu0 %vm500_vm2, %v1493_v61 }
 0x8b5   :  { %4057 = vmatpush3.xpose.msk.msra.mxu0 %vm500_vm2, %v1661_v27  ;;  %4058 = vmatprep.mubr.msk.f32.mxu0 %vm4753_vm1, %v4752_v20 }
 0x8b8   :  { %4059 = vmatmul.mubr.msk.f32.vlgmr.msra.gmra.mrb[20].mxu0 %vm500_vm2, %v1659_v62 }
 0x8d7   :  { %v1244_v63 = vpop.xlane.xlu1 %1243 }
 0x8d8   :  { %v1245_v0 = vsub.f32 %v5163_v6, %v1244_v63 }
 0x8da   :  { %v1246_v1 = vmul.f32 1.442695, %v1245_v0 }
 0x8dc   :  { %4357 = vpow2.f32 %v1246_v1 }
 0x8e6   :  { %v4358_v2 = vpop.eup %4357 }
 0x8e7   :  { %v1248_v3 = vsel %vm500_vm2, %v4358_v2, 0.0 }
 0x8e8   :  { %1249 = vadd.xlane.f32.xlu1 %v1248_v3 }
 0x975   :  { %v1250_v4 = vpop.xlane.xlu1 %1249 }
 0x976   :  { %4359 = vrcp.f32 %v1250_v4 }
 0x980   :  { %v4360_v7 = vpop.eup %4359 }
 0x981   :  { %v1252_v8 = vmul.f32 %v4360_v7, %v4358_v2  ;;  %v5252_v2 = vld [vmem:[#allocation21] ss:$0 sm:$0xff] }
 0x982   :  { %v1966_v7 = vld [vmem:[%s5560_s11] sm:$0xff] }
 0x983   :  { %v1415_v9 = vpop.f32.mrb[16].mxu0  ;;  %4044 = vmatmul.mubr.msk.f32.vlgmr.msra.gmra.mrb[10].mxu1 %vm500_vm2, %v1252_v8  ;;  %v1967_v8 = vld [vmem:[%s5560_s11 + $0x8] sm:$0xff] }
 0x984   :  { %v4040_v10 = vpop.f32.mrb[17].mxu0  ;;  %4053 = vmatprep.mubr.msk.f32.mxu1 %vm4753_vm1, %v4752_v20 }
 0x985   :  { %v1874_v10 = vld [vmem:[%s5558_s9] sm:$0xff] }
 0x987   :  { %v1566_v11 = vpop.f32.mrb[18].mxu0 }
 0x988   :  { %v4050_v13 = vpop.f32.mrb[19].mxu0  ;;  %v1570_v6 = vsel %vm500_vm2, %v1566_v11, -inf }
 0x989   :  { %1571 = vmax.xlane.f32.xlu0 %v1570_v6  ;;  %v1968_v13 = vld [vmem:[%s5560_s11 + $0x10] sm:$0xff] }
 0x98b   :  { %v1732_v14 = vpop.f32.mrb[20].mxu0 }
 0x98c   :  { %v4060_v15 = vpop.f32.mrb[21].mxu0  ;;  %v1736_v16 = vsel %vm500_vm2, %v1732_v14, -inf }
 0x98d   :  { %1737 = vmax.xlane.f32.xlu0 %v1736_v16  ;;  %v230_v16 = vld [vmem:[#allocation6] sm:$0xff] }
 0xa16   :  { %v1572_v17 = vpop.xlane.xlu0 %1571 }
 0xa17   :  { %v1573_v18 = vsub.f32 %v1566_v11, %v1572_v17  ;;  %v1875_v11 = vld [vmem:[%s5558_s9 + $0x8] sm:$0xff]  ;;  %v1876_v17 = vld [vmem:[%s5558_s9 + $0x10] sm:$0xff] }
 0xa18   :  { %v4249_v6 = vpack.c.bf16 %v1875_v11, %v1874_v10 }
 0xa19   :  { %v1574_v19 = vmul.f32 1.442695, %v1573_v18  ;;  %v1877_v18 = vld [vmem:[%s5558_s9 + $0x18] sm:$0xff] }
 0xa1a   :  { %v1738_v21 = vpop.xlane.xlu0 %1737  ;;  %4250 = vmatprep.subr.bf16.mxu0 %v4249_v6 }
 0xa1b   :  { %4361 = vpow2.f32 %v1574_v19  ;;  %v1739_v22 = vsub.f32 %v1732_v14, %v1738_v21  ;;  %v1969_v14 = vld [vmem:[%s5560_s11 + $0x18] sm:$0xff]  ;;  %4252 = vmatpush3.bf16.msra.mxu0 %v4249_v6  ;;  %v4253_v19 = vpack.c.bf16 %v1877_v18, %v1876_v17  ;;  %v231_v21 = vld [vmem:[#allocation6 + $0x8] sm:$0xff] }
 0xa1c   :  { %v4261_v15 = vpack.c.bf16 %v1969_v14, %v1968_v13 }
 0xa1d   :  { %v1740_v24 = vmul.f32 1.442695, %v1739_v22  ;;  %4254 = vmatprep.subr.bf16.mxu0 %v4253_v19 }
 0xa1f   :  { %4363 = vpow2.f32 %v1740_v24  ;;  %4256 = vmatpush3.bf16.msra.mxu0 %v4253_v19 }
 0xa25   :  { %v4362_v25 = vpop.eup %4361 }
 0xa26   :  { %v1576_v26 = vsel %vm500_vm2, %v4362_v25, 0.0 }
 0xa27   :  { %1577 = vadd.xlane.f32.xlu0 %v1576_v26 }
 0xa29   :  { %v4364_v28 = vpop.eup %4363 }
 0xa2a   :  { %v1742_v29 = vsel %vm500_vm2, %v4364_v28, 0.0 }
 0xa2b   :  { %1743 = vadd.xlane.f32.xlu1 %v1742_v29 }
 0xa3c   :  { %1747 = vrot.lane.b32.xlu1 %v5118_v33, %s4759_s8 }
 0xa3d   :  { %1581 = vrot.lane.b32.xlu0 %v5118_v33, %s4758_s30 }
 0xa56   :  { %v1488_v30 = vpop.f32.mrb[10].mxu1 }
 0xa57   :  { %v1489_v31 = vadd.f32 %v1488_v30, %v1415_v9  ;;  %v4045_v32 = vpop.f32.mrb[11].mxu1  ;;  %v4257_v9 = vpack.c.bf16 %v1967_v8, %v1966_v7 }
 0xa60   :  { %1832 = vadd.xlane.f32.xlu1 %v1831_v35 }
 0xab4   :  { %v1578_v37 = vpop.xlane.xlu0 %1577 }
 0xab5   :  { %4365 = vrcp.f32 %v1578_v37  ;;  %v3791_v37 = vld [vmem:[#allocation14] ss:$0 sm:$0xff] }
 0xab8   :  { %v1744_v38 = vpop.xlane.xlu1 %1743  ;;  %v1582_v39 = vpop.permute.xlu0 %1581 }
 0xab9   :  { %4367 = vrcp.f32 %v1744_v38  ;;  %4052 = vmatpush3.msra.mxu1 %v1582_v39 }
 0xaba   :  { %4061 = vmatprep.subr.mxu1 %v4752_v20 }
 0xabc   :  { %v1748_v33 = vpop.permute.xlu1 %1747 }
 0xabf   :  { %v4366_v40 = vpop.eup %4365 }
 0xac0   :  { %v1580_v41 = vmul.f32 %v4366_v40, %v4362_v25 }
 0xac2   :  { %4054 = vmatmul.mubr.msk.f32.vlgmr.msra.gmra.mrb[12].mxu1 %vm500_vm2, %v1580_v41 }
 0xac3   :  { %v4368_v42 = vpop.eup %4367  ;;  %4062 = vmatpush3.msra.mxu1 %v1748_v33  ;;  %4063 = vmatprep.mubr.msk.f32.mxu1 %vm4753_vm1, %v4752_v20 }
 0xac4   :  { %v1746_v5 = vmul.f32 %v4368_v42, %v4364_v28  ;;  %4258 = vmatprep.subr.bf16.mxu1 %v4257_v9  ;;  %v2058_v42 = vld [vmem:[%s5562_s13] sm:$0xff] }
 0xac6   :  { %4064 = vmatmul.mubr.msk.f32.vlgmr.msra.gmra.mrb[14].mxu1 %vm500_vm2, %v1746_v5  ;;  %v2059_v5 = vld [vmem:[%s5562_s13 + $0x8] sm:$0xff] }
 0xac7   :  { %4260 = vmatpush3.bf16.msra.mxu1 %v4257_v9  ;;  %4085 = vmatprep.mubr.msk.f32.mxu1 %vm245_vm0, %v230_v16 }
 0xac8   :  { %4262 = vmatprep.subr.bf16.mxu1 %v4261_v15 }
 0xacb   :  { %4264 = vmatpush3.bf16.msra.mxu1 %v4261_v15 }
 0xacc   :  { %4099 = vmatprep.subr.mxu1 %v4752_v20 }
 0xace   :  { %4086 = vmatmul.mubr.msk.f32.vlgmr.msra.gmra.mrb[16].mxu1 %vm245_vm0, %v231_v21 }
 0xacf   :  { %4101 = vmatprep.mubr.msk.f32.mxu1 %vm4753_vm1, %v4752_v20 }
 0xaed   :  { %v1833_v51 = vpop.xlane.xlu1 %1832 }
 0xaee   :  { %v1838_v52 = vmul.f32 0.03125, %v1833_v51 }
 0xaf0   :  { %v1840_v53 = vsub.f32 %v1829_v36, %v1838_v52 }
 0xaf2   :  { %v1842_v57 = vmul.f32 %v1840_v53, %v1840_v53 }
 0xaf4   :  { %v1844_v23 = vsel %vm245_vm0, %v1842_v57, 0.0 }
 0xb95   :  { %v1653_v44 = vpop.f32.mrb[12].mxu1 }
 0xb96   :  { %v1657_v45 = vadd.f32 %v1653_v44, %v1489_v31  ;;  %v4055_v46 = vpop.f32.mrb[13].mxu1  ;;  %v3794_v31 = vld [vmem:[#allocation15] ss:$0 sm:$0xff]  ;;  %v2060_v44 = vld [vmem:[%s5562_s13 + $0x10] sm:$0xff] }
 0xb97   :  { %v2061_v46 = vld [vmem:[%s5562_s13 + $0x18] sm:$0xff] }
 0xb99   :  { %v1819_v47 = vpop.f32.mrb[14].mxu1 }
 0xb9a   :  { %v1823_v48 = vadd.f32 %v1819_v47, %v1657_v45  ;;  %v4065_v49 = vpop.f32.mrb[15].mxu1  ;;  %v4265_v45 = vpack.c.bf16 %v2059_v5, %v2058_v42  ;;  %v4269_v47 = vpack.c.bf16 %v2061_v46, %v2060_v44 }
 0xb9c   :  { %v1824_v50 = vadd.f32 %v5197_v43, %v1823_v48  ;;  %4266 = vmatprep.subr.bf16.mxu0 %v4265_v45 }
 0xb9e   :  { %1826 = vst.msk [vmem:[#allocation2 + $0x8] sm:$0xff] %vm245_vm0, %v1824_v50 }
 0xba1   :  { %v4087_v32 = vpop.f32.mrb[16].mxu1 }
 0xba2   :  { %v5296_v34 = vadd.f32 %v4087_v32, %v3794_v31  ;;  %v2049_v36 = vpop.f32.mrb[17].mxu1 }
 0xba3   :  { %v2050_v35 = vadd.f32 %v3794_v31, %v2049_v36 }
 0xba5   :  { %v1828_v54 = vld [vmem:[#allocation2 + $0x8] sm:$0xff]  ;;  %4100 = vmatpush3.xpose.msk.msra.mxu1 %vm500_vm2, %v2050_v35 }
 0xba6   :  { %v1830_v55 = vadd.f32 %v1828_v54, %v5077_v12  ;;  %v5250_v12 = vld [vmem:[#allocation20] ss:$0 sm:$0xff]  ;;  %4104 = vmatprep.subr.mxu1 %v4752_v20 }
 0xba8   :  { %v1834_v56 = vsel %vm245_vm0, %v1830_v55, 0.0 }
 0xba9   :  { %1835 = vadd.xlane.f32.xlu0 %v1834_v56 }
 0xbad   :  { %1845 = vadd.xlane.f32.xlu0 %v1844_v23 }
 0xbc3   :  { %2234 = vrot.lane.b32.xlu0 %v2050_v35, %s4754_s23 }
 0xc36   :  { %v1836_v58 = vpop.xlane.xlu0 %1835 }
 0xc37   :  { %v1839_v59 = vmul.f32 0.03125, %v1836_v58 }
 0xc39   :  { %v1841_v60 = vsub.f32 %v1830_v55, %v1839_v59  ;;  %v3797_v55 = vld [vmem:[#allocation17] ss:$0 sm:$0xff] }
 0xc3a   :  { %v1846_v61 = vpop.xlane.xlu0 %1845 }
 0xc3b   :  { %v1850_v43 = vmul.f32 0.03125, %v1846_v61  ;;  %v1843_v27 = vmul.f32 %v1841_v60, %v1841_v60 }
 0xc3d   :  { %v1852_v62 = vadd.f32 1e-05, %v1850_v43  ;;  %v1847_v63 = vsel %vm245_vm0, %v1843_v27, 0.0 }
 0xc3e   :  { %1848 = vadd.xlane.f32.xlu1 %v1847_v63  ;;  %v2235_v33 = vpop.permute.xlu0 %2234 }
 0xc3f   :  { %4369 = vrsqrt.f32 %v1852_v62 }
 0xc49   :  { %v4370_v0 = vpop.eup %4369 }
 0xc4a   :  { %v1856_v1 = vmul.f32 %v4370_v0, %v1840_v53 }
 0xc4c   :  { %v1864_v3 = vmul.f32 %v5250_v12, %v1856_v1 }
 0xc4e   :  { %v5256_v4 = vadd.f32 %v5252_v2, %v1864_v3 }
 0xc50   :  { %4074 = vmatprep.mubr.msk.f32.mxu0 %vm245_vm0, %v5256_v4 }
 0xccb   :  { %v1849_v22 = vpop.xlane.xlu1 %1848 }
 0xccc   :  { %v1851_v24 = vmul.f32 0.03125, %v1849_v22 }
 0xcce   :  { %v1853_v25 = vadd.f32 1e-05, %v1851_v24 }
 0xcd0   :  { %4371 = vrsqrt.f32 %v1853_v25 }
 0xcda   :  { %v4372_v26 = vpop.eup %4371 }
 0xcdb   :  { %v1857_v28 = vmul.f32 %v4372_v26, %v1841_v60 }
 0xcdd   :  { %v1865_v29 = vmul.f32 %v5250_v12, %v1857_v28 }
 0xcdf   :  { %v5291_v30 = vadd.f32 %v5252_v2, %v1865_v29 }
 0xce1   :  { %4075 = vmatmul.mubr.msk.f32.vlgmr.msra.gmra.mrb[22].mxu0 %vm245_vm0, %v5291_v30 }
 0xce2   :  { %4096 = vmatprep.mubr.msk.f32.mxu0 %vm245_vm0, %v230_v16  ;;  %4268 = vmatpush3.bf16.msra.mxu0 %v4265_v45 }
 0xce3   :  { %4270 = vmatprep.subr.bf16.mxu0 %v4269_v47 }
 0xce6   :  { %4272 = vmatpush3.bf16.msra.mxu0 %v4269_v47 }
 0xce7   :  { %4109 = vmatprep.subr.mxu0 %v4752_v20 }
 0xce9   :  { %4097 = vmatmul.mubr.msk.f32.vlgmr.msra.gmra.mrb[24].mxu0 %vm245_vm0, %v231_v21 }
 0xcea   :  { %4111 = vmatprep.mubr.msk.f32.mxu0 %vm4753_vm1, %v4752_v20 }
 0xdb4   :  { %v4076_v38 = vpop.f32.mrb[22].mxu0 }
 0xdb5   :  { %v5301_v39 = vadd.f32 %v4076_v38, %v3791_v37  ;;  %v1957_v40 = vpop.f32.mrb[23].mxu0 }
 0xdb6   :  { %v1958_v41 = vadd.f32 %v3791_v37, %v1957_v40 }
 0xdb8   :  { %2232 = vrot.lane.b32.xlu1 %v1958_v41, %s4754_s23  ;;  %4102 = vmatmul.mubr.msk.f32.vlgmr.msra.gmra.mrb[18].mxu1 %vm500_vm2, %v1958_v41 }
 0xdb9   :  { %4105 = vmatpush3.xpose.msk.msra.mxu1 %vm500_vm2, %v2235_v33  ;;  %4106 = vmatprep.mubr.msk.f32.mxu1 %vm4753_vm1, %v4752_v20 }
 0xdba   :  { %4114 = vmatprep.subr.mxu1 %v4752_v20 }
 0xdbc   :  { %v4098_v54 = vpop.f32.mrb[24].mxu0 }
 0xdbd   :  { %v5332_v56 = vadd.f32 %v4098_v54, %v3797_v55  ;;  %v2135_v57 = vpop.f32.mrb[25].mxu0 }
 0xdbe   :  { %v5334_v23 = vadd.f32 %v3797_v55, %v2135_v57 }
 0xe2a   :  { %v2233_v48 = vpop.permute.xlu1 %2232 }
 0xe2b   :  { %4107 = vmatmul.mubr.msk.f32.vlgmr.msra.gmra.mrb[20].mxu1 %vm500_vm2, %v2233_v48 }
 0xe2c   :  { %4116 = vmatprep.mubr.msk.f32.mxu1 %vm4753_vm1, %v4752_v20  ;;  %4115 = vmatpush3.msra.mxu1 %v5334_v23 }
 0xe2d   :  { %4124 = vmatprep.subr.mxu1 %v4752_v20 }
 0xe8b   :  { %v2217_v49 = vpop.f32.mrb[18].mxu1 }
 0xe8c   :  { %v4103_v50 = vpop.f32.mrb[19].mxu1  ;;  %v2221_v27 = vsel %vm500_vm2, %v2217_v49, -inf }
 0xefe   :  { %v2306_v51 = vpop.f32.mrb[20].mxu1 }
 0xeff   :  { %v4108_v52 = vpop.f32.mrb[21].mxu1  ;;  %v2310_v53 = vsel %vm500_vm2, %v2306_v51, -inf }
 0xf00   :  { %2311 = vmax.xlane.f32.xlu1 %v2310_v53 }
 0xf11   :  { %2473 = vrot.lane.b32.xlu1 %v2050_v35, %s4756_s26 }
 0xf15   :  { %2471 = vrot.lane.b32.xlu1 %v1958_v41, %s4756_s26 }
 0xf19   :  { %2637 = vrot.lane.b32.xlu1 %v1958_v41, %s4757_s14 }
 0xf8d   :  { %v2312_v58 = vpop.xlane.xlu1 %2311 }
 0xf8e   :  { %v2313_v59 = vsub.f32 %v2306_v51, %v2312_v58 }
 0xf90   :  { %v2314_v60 = vmul.f32 1.442695, %v2313_v59 }
 0xf91   :  { %v2474_v0 = vpop.permute.xlu1 %2473 }
 0xf92   :  { %4373 = vpow2.f32 %v2314_v60  ;;  %v5402_v60 = vld [vmem:[#allocation18] ss:$0 sm:$0xff] }
 0xf95   :  { %v2472_v7 = vpop.permute.xlu1 %2471 }
 0xf99   :  { %v2638_v9 = vpop.permute.xlu1 %2637 }
 0xf9c   :  { %v4374_v61 = vpop.eup %4373 }
 0xf9d   :  { %v2316_v43 = vsel %vm500_vm2, %v4374_v61, 0.0 }
 0xf9e   :  { %2317 = vadd.xlane.f32.xlu0 %v2316_v43 }
 0xfb4   :  { %2322 = vrot.lane.b32.xlu0 %v5334_v23, %s4755_s2 }
 0xfb8   :  { %2639 = vrot.lane.b32.xlu0 %v2050_v35, %s4757_s14 }
 0xfd7   :  { %2222 = vmax.xlane.f32.xlu0 %v2221_v27 }
0x102b   :  { %v2318_v62 = vpop.xlane.xlu0 %2317 }
0x102c   :  { %4375 = vrcp.f32 %v2318_v62 }
0x102f   :  { %v2323_v63 = vpop.permute.xlu0 %2322 }
0x1030   :  { %4110 = vmatpush3.msra.mxu0 %v2323_v63 }
0x1031   :  { %4119 = vmatprep.subr.mxu0 %v4752_v20 }
0x1033   :  { %v2640_v8 = vpop.permute.xlu0 %2639 }
0x1036   :  { %v4376_v1 = vpop.eup %4375 }
0x1037   :  { %v2320_v3 = vmul.f32 %v4376_v1, %v4374_v61 }
0x1039   :  { %4112 = vmatmul.mubr.msk.f32.vlgmr.msra.gmra.mrb[26].mxu0 %vm500_vm2, %v2320_v3 }
0x103a   :  { %4120 = vmatpush3.xpose.msk.msra.mxu0 %vm500_vm2, %v2474_v0  ;;  %4121 = vmatprep.mubr.msk.f32.mxu0 %vm4753_vm1, %v4752_v20 }
0x103b   :  { %4129 = vmatprep.subr.mxu0 %v4752_v20 }
0x103d   :  { %4122 = vmatmul.mubr.msk.f32.vlgmr.msra.gmra.mrb[28].mxu0 %vm500_vm2, %v2472_v7 }
0x103e   :  { %4130 = vmatpush3.xpose.msk.msra.mxu0 %vm500_vm2, %v2640_v8  ;;  %4131 = vmatprep.mubr.msk.f32.mxu0 %vm4753_vm1, %v4752_v20 }
0x103f   :  { %4139 = vmatprep.subr.mxu0 %v4752_v20 }
0x1041   :  { %4132 = vmatmul.mubr.msk.f32.vlgmr.msra.gmra.mrb[30].mxu0 %vm500_vm2, %v2638_v9 }
0x1042   :  { %4140 = vmatpush3.xpose.msk.msra.mxu0 %vm500_vm2, %v5296_v34  ;;  %4141 = vmatprep.mubr.msk.f32.mxu0 %vm4753_vm1, %v4752_v20 }
0x1043   :  { %4149 = vmatprep.subr.mxu0 %v4752_v20 }
0x1045   :  { %4142 = vmatmul.mubr.msk.f32.vlgmr.msra.gmra.mrb[32].mxu0 %vm500_vm2, %v5301_v39 }
0x1046   :  { %4151 = vmatprep.mubr.msk.f32.mxu0 %vm4753_vm1, %v4752_v20 }
0x1064   :  { %v2223_v10 = vpop.xlane.xlu0 %2222 }
0x1065   :  { %v2224_v11 = vsub.f32 %v2217_v49, %v2223_v10 }
0x1067   :  { %v2225_v13 = vmul.f32 1.442695, %v2224_v11 }
0x1069   :  { %4377 = vpow2.f32 %v2225_v13 }
0x1073   :  { %v4378_v22 = vpop.eup %4377 }
0x1074   :  { %v2227_v26 = vsel %vm500_vm2, %v4378_v22, 0.0 }
0x110c   :  { %v5364_v6 = vpop.f32.mrb[26].mxu0 }
0x110d   :  { %v4113_v14 = vpop.f32.mrb[27].mxu0 }
0x1110   :  { %v2545_v15 = vpop.f32.mrb[28].mxu0 }
0x1111   :  { %v4123_v16 = vpop.f32.mrb[29].mxu0  ;;  %v2549_v17 = vsel %vm500_vm2, %v2545_v15, -inf }
0x1112   :  { %2550 = vmax.xlane.f32.xlu1 %v2549_v17 }
0x1114   :  { %v2711_v18 = vpop.f32.mrb[30].mxu0 }
0x1115   :  { %v4133_v19 = vpop.f32.mrb[31].mxu0  ;;  %v2715_v21 = vsel %vm500_vm2, %v2711_v18, -inf }
0x1116   :  { %2716 = vmax.xlane.f32.xlu0 %v2715_v21 }
0x1118   :  { %v5368_v24 = vpop.f32.mrb[32].mxu0 }
0x1119   :  { %v4143_v25 = vpop.f32.mrb[33].mxu0  ;;  %v2886_v13 = vsel %vm500_vm2, %v5368_v24, -inf }
0x111a   :  { %2228 = vadd.xlane.f32.xlu0 %v2227_v26 }
0x1123   :  { %2560 = vrot.lane.b32.xlu1 %v5334_v23, %s4758_s30 }
0x119f   :  { %v2551_v28 = vpop.xlane.xlu1 %2550 }
0x11a0   :  { %v2552_v29 = vsub.f32 %v2545_v15, %v2551_v28 }
0x11a2   :  { %v2553_v31 = vmul.f32 1.442695, %v2552_v29 }
0x11a3   :  { %v2717_v32 = vpop.xlane.xlu0 %2716  ;;  %v2561_v44 = vpop.permute.xlu1 %2560 }
0x11a4   :  { %4379 = vpow2.f32 %v2553_v31  ;;  %v2718_v36 = vsub.f32 %v2711_v18, %v2717_v32 }
0x11a6   :  { %v2719_v35 = vmul.f32 1.442695, %v2718_v36 }
0x11a7   :  { %v2229_v37 = vpop.xlane.xlu0 %2228 }
0x11a8   :  { %4381 = vpow2.f32 %v2719_v35 }
0x11a9   :  { %4383 = vrcp.f32 %v2229_v37 }
0x11ae   :  { %v4380_v38 = vpop.eup %4379 }
0x11af   :  { %v2555_v40 = vsel %vm500_vm2, %v4380_v38, 0.0 }
0x11b0   :  { %2556 = vadd.xlane.f32.xlu1 %v2555_v40 }
0x11b2   :  { %v4382_v41 = vpop.eup %4381 }
0x11b3   :  { %v4384_v33 = vpop.eup %4383  ;;  %v2721_v42 = vsel %vm500_vm2, %v4382_v41, 0.0 }
0x11b4   :  { %v2231_v5 = vmul.f32 %v4384_v33, %v4378_v22  ;;  %2722 = vadd.xlane.f32.xlu0 %v2721_v42 }
0x11b6   :  { %4117 = vmatmul.mubr.msk.f32.vlgmr.msra.gmra.mrb[22].mxu1 %vm500_vm2, %v2231_v5 }
0x11b7   :  { %4125 = vmatpush3.msra.mxu1 %v2561_v44  ;;  %4126 = vmatprep.mubr.msk.f32.mxu1 %vm4753_vm1, %v4752_v20 }
0x11b8   :  { %4134 = vmatprep.subr.mxu1 %v4752_v20 }
0x11c1   :  { %2899 = vrot.lane.b32.xlu1 %v5296_v34, %s4754_s23 }
0x11c5   :  { %2897 = vrot.lane.b32.xlu1 %v5301_v39, %s4754_s23 }
0x11c9   :  { %3138 = vrot.lane.b32.xlu1 %v5296_v34, %s4756_s26 }
0x11ca   :  { %2726 = vrot.lane.b32.xlu0 %v5334_v23, %s4759_s8 }
0x123d   :  { %v2557_v45 = vpop.xlane.xlu1 %2556 }
0x123e   :  { %4385 = vrcp.f32 %v2557_v45 }
0x1241   :  { %v2723_v46 = vpop.xlane.xlu0 %2722  ;;  %v2900_v52 = vpop.permute.xlu1 %2899 }
0x1242   :  { %4387 = vrcp.f32 %v2723_v46 }
0x1245   :  { %v2727_v49 = vpop.permute.xlu0 %2726  ;;  %v2898_v53 = vpop.permute.xlu1 %2897 }
0x1248   :  { %v4386_v47 = vpop.eup %4385 }
0x1249   :  { %v2559_v48 = vmul.f32 %v4386_v47, %v4380_v38 }
0x124b   :  { %4127 = vmatmul.mubr.msk.f32.vlgmr.msra.gmra.mrb[24].mxu1 %vm500_vm2, %v2559_v48 }
0x124c   :  { %v4388_v50 = vpop.eup %4387  ;;  %4135 = vmatpush3.msra.mxu1 %v2727_v49  ;;  %4136 = vmatprep.mubr.msk.f32.mxu1 %vm4753_vm1, %v4752_v20 }
0x124d   :  { %v2725_v51 = vmul.f32 %v4388_v50, %v4382_v41  ;;  %4144 = vmatprep.subr.mxu1 %v4752_v20 }
0x124f   :  { %4137 = vmatmul.mubr.msk.f32.vlgmr.msra.gmra.mrb[26].mxu1 %vm500_vm2, %v2725_v51 }
0x1250   :  { %4146 = vmatprep.mubr.msk.f32.mxu1 %vm4753_vm1, %v4752_v20 }
0x1253   :  { %4145 = vmatpush3.xpose.msk.msra.mxu1 %vm500_vm2, %v2900_v52 }
0x1254   :  { %4154 = vmatprep.subr.mxu1 %v4752_v20 }
0x1256   :  { %4147 = vmatmul.mubr.msk.f32.vlgmr.msra.gmra.mrb[28].mxu1 %vm500_vm2, %v2898_v53 }
0x1257   :  { %4155 = vmatpush3.msra.mxu1 %v5332_v56  ;;  %4156 = vmatprep.mubr.msk.f32.mxu1 %vm4753_vm1, %v4752_v20 }
0x1258   :  { %4164 = vmatprep.subr.mxu1 %v4752_v20 }
0x1289   :  { %v2467_v54 = vpop.f32.mrb[22].mxu1 }
0x128a   :  { %v2468_v55 = vadd.f32 %v2467_v54, %v5364_v6  ;;  %v4118_v57 = vpop.f32.mrb[23].mxu1 }
0x131e   :  { %v2632_v23 = vpop.f32.mrb[24].mxu1 }
0x131f   :  { %v2636_v58 = vadd.f32 %v2632_v23, %v2468_v55  ;;  %v4128_v59 = vpop.f32.mrb[25].mxu1 }
0x1322   :  { %v2798_v61 = vpop.f32.mrb[26].mxu1 }
0x1323   :  { %v2802_v43 = vadd.f32 %v2798_v61, %v2636_v58  ;;  %v4138_v27 = vpop.f32.mrb[27].mxu1 }
0x1325   :  { %v2809_v62 = vadd.f32 %v5402_v60, %v2802_v43 }
0x1327   :  { %3469 = vst.msk [vmem:[#allocation2] sm:$0xff] %vm245_vm0, %v2809_v62 }
0x1329   :  { %v2971_v63 = vpop.f32.mrb[28].mxu1 }
0x132a   :  { %v4148_v0 = vpop.f32.mrb[29].mxu1  ;;  %v2975_v1 = vsel %vm500_vm2, %v2971_v63, -inf }
0x132b   :  { %2976 = vmax.xlane.f32.xlu0 %v2975_v1 }
0x132e   :  { %v3471_v53 = vld [vmem:[#allocation2] sm:$0xff] }
0x132f   :  { %v3473_v54 = vadd.f32 %v3471_v53, %v5256_v4  ;;  %v3611_v53 = vld [vmem:[%s5569_s20 + $0x60] sm:$0xff] }
0x1331   :  { %v3475_v55 = vsel %vm245_vm0, %v3473_v54, 0.0 }
0x1341   :  { %2987 = vrot.lane.b32.xlu0 %v5332_v56, %s4755_s2 }
0x1345   :  { %3136 = vrot.lane.b32.xlu0 %v5301_v39, %s4756_s26 }
0x1349   :  { %3302 = vrot.lane.b32.xlu0 %v5301_v39, %s4757_s14  ;;  %v3139_v39 = vpop.permute.xlu1 %3138 }
0x13b8   :  { %v2977_v3 = vpop.xlane.xlu0 %2976 }
0x13b9   :  { %v2978_v7 = vsub.f32 %v2971_v63, %v2977_v3 }
0x13bb   :  { %v2979_v8 = vmul.f32 1.442695, %v2978_v7 }
0x13bc   :  { %v2988_v9 = vpop.permute.xlu0 %2987 }
0x13bd   :  { %4389 = vpow2.f32 %v2979_v8  ;;  %4150 = vmatpush3.msra.mxu0 %v2988_v9 }
0x13be   :  { %4159 = vmatprep.subr.mxu0 %v4752_v20 }
0x13c0   :  { %v3137_v16 = vpop.permute.xlu0 %3136 }
0x13c4   :  { %v3303_v17 = vpop.permute.xlu0 %3302 }
0x13c7   :  { %v4390_v10 = vpop.eup %4389 }
0x13c8   :  { %v2981_v11 = vsel %vm500_vm2, %v4390_v10, 0.0 }
0x13c9   :  { %2982 = vadd.xlane.f32.xlu1 %v2981_v11 }
0x13da   :  { %3304 = vrot.lane.b32.xlu1 %v5296_v34, %s4757_s14 }
0x13fe   :  { %2887 = vmax.xlane.f32.xlu1 %v2886_v13 }
0x1456   :  { %v2983_v6 = vpop.xlane.xlu1 %2982 }
0x1457   :  { %4391 = vrcp.f32 %v2983_v6 }
0x145a   :  { %v3305_v34 = vpop.permute.xlu1 %3304 }
0x1461   :  { %v4392_v14 = vpop.eup %4391 }
0x1462   :  { %v2985_v15 = vmul.f32 %v4392_v14, %v4390_v10 }
0x1464   :  { %4152 = vmatmul.mubr.msk.f32.vlgmr.msra.gmra.mrb[34].mxu0 %vm500_vm2, %v2985_v15 }
0x1465   :  { %4160 = vmatpush3.xpose.msk.msra.mxu0 %vm500_vm2, %v3139_v39  ;;  %4161 = vmatprep.mubr.msk.f32.mxu0 %vm4753_vm1, %v4752_v20 }
0x1466   :  { %4169 = vmatprep.subr.mxu0 %v4752_v20 }
0x1468   :  { %4162 = vmatmul.mubr.msk.f32.vlgmr.msra.gmra.mrb[36].mxu0 %vm500_vm2, %v3137_v16 }
0x1469   :  { %4170 = vmatpush3.xpose.msk.msra.mxu0 %vm500_vm2, %v3305_v34  ;;  %4171 = vmatprep.mubr.msk.f32.mxu0 %vm4753_vm1, %v4752_v20 }
0x146c   :  { %4172 = vmatmul.mubr.msk.f32.vlgmr.msra.gmra.mrb[38].mxu0 %vm500_vm2, %v3303_v17 }
0x148b   :  { %v2888_v18 = vpop.xlane.xlu1 %2887 }
0x148c   :  { %v2889_v19 = vsub.f32 %v5368_v24, %v2888_v18 }
0x148e   :  { %v2890_v21 = vmul.f32 1.442695, %v2889_v19 }
0x1490   :  { %4393 = vpow2.f32 %v2890_v21 }
0x149a   :  { %v4394_v22 = vpop.eup %4393 }
0x149b   :  { %v2892_v25 = vsel %vm500_vm2, %v4394_v22, 0.0 }
0x149c   :  { %2893 = vadd.xlane.f32.xlu1 %v2892_v25 }
0x1529   :  { %v2894_v26 = vpop.xlane.xlu1 %2893 }
0x152a   :  { %4395 = vrcp.f32 %v2894_v26  ;;  %v3505_v26 = vld [vmem:[#allocation23] sm:$0xff] }
0x1534   :  { %v4396_v28 = vpop.eup %4395 }
0x1535   :  { %v2896_v29 = vmul.f32 %v4396_v28, %v4394_v22  ;;  %v3506_v28 = vld [vmem:[#allocation23 + $0x8] sm:$0xff] }
0x1537   :  { %v3059_v31 = vpop.f32.mrb[34].mxu0  ;;  %4157 = vmatmul.mubr.msk.f32.vlgmr.msra.gmra.mrb[30].mxu1 %vm500_vm2, %v2896_v29  ;;  %v4273_v29 = vpack.c.bf16 %v3506_v28, %v3505_v26 }
0x1538   :  { %v4153_v32 = vpop.f32.mrb[35].mxu0  ;;  %4166 = vmatprep.mubr.msk.f32.mxu1 %vm4753_vm1, %v4752_v20 }
0x1539   :  { %4274 = vmatprep.subr.bf16.mxu0 %v4273_v29  ;;  %v3508_v32 = vld [vmem:[#allocation23 + $0x18] sm:$0xff] }
0x153a   :  { %4276 = vmatpush3.bf16.msra.mxu0 %v4273_v29 }
0x153b   :  { %v3210_v36 = vpop.f32.mrb[36].mxu0 }
0x153c   :  { %v4163_v35 = vpop.f32.mrb[37].mxu0  ;;  %v3214_v24 = vsel %vm500_vm2, %v3210_v36, -inf }
0x153d   :  { %3215 = vmax.xlane.f32.xlu0 %v3214_v24  ;;  %v3599_v35 = vld [vmem:[%s5569_s20] sm:$0xff]  ;;  %v3600_v24 = vld [vmem:[%s5569_s20 + $0x8] sm:$0xff] }
0x153f   :  { %v3376_v37 = vpop.f32.mrb[38].mxu0 }
0x1540   :  { %v4173_v38 = vpop.f32.mrb[39].mxu0  ;;  %v3380_v40 = vsel %vm500_vm2, %v3376_v37, -inf }
0x1541   :  { %3381 = vmax.xlane.f32.xlu0 %v3380_v40  ;;  %v4281_v38 = vpack.c.bf16 %v3600_v24, %v3599_v35  ;;  %v3602_v40 = vld [vmem:[%s5569_s20 + $0x18] sm:$0xff] }
0x15ca   :  { %v3216_v41 = vpop.xlane.xlu0 %3215 }
0x15cb   :  { %v3217_v33 = vsub.f32 %v3210_v36, %v3216_v41 }
0x15cd   :  { %v3218_v42 = vmul.f32 1.442695, %v3217_v33  ;;  %v3603_v33 = vld [vmem:[%s5569_s20 + $0x20] sm:$0xff] }
0x15ce   :  { %v3382_v5 = vpop.xlane.xlu0 %3381 }
0x15cf   :  { %4397 = vpow2.f32 %v3218_v42  ;;  %v3383_v44 = vsub.f32 %v3376_v37, %v3382_v5  ;;  %v3601_v37 = vld [vmem:[%s5569_s20 + $0x10] sm:$0xff]  ;;  %v3604_v42 = vld [vmem:[%s5569_s20 + $0x28] sm:$0xff] }
0x15d0   :  { %v4285_v41 = vpack.c.bf16 %v3602_v40, %v3601_v37  ;;  %v4289_v5 = vpack.c.bf16 %v3604_v42, %v3603_v33 }
0x15d1   :  { %v3384_v45 = vmul.f32 1.442695, %v3383_v44  ;;  %v3605_v44 = vld [vmem:[%s5569_s20 + $0x30] sm:$0xff] }
0x15d3   :  { %4399 = vpow2.f32 %v3384_v45  ;;  %v3606_v45 = vld [vmem:[%s5569_s20 + $0x38] sm:$0xff] }
0x15d9   :  { %v4398_v46 = vpop.eup %4397 }
0x15da   :  { %v3220_v47 = vsel %vm500_vm2, %v4398_v46, 0.0 }
0x15db   :  { %3221 = vadd.xlane.f32.xlu0 %v3220_v47  ;;  %v3607_v47 = vld [vmem:[%s5569_s20 + $0x40] sm:$0xff] }
0x15dd   :  { %v4400_v48 = vpop.eup %4399 }
0x15de   :  { %v3386_v49 = vsel %vm500_vm2, %v4400_v48, 0.0 }
0x15df   :  { %3387 = vadd.xlane.f32.xlu1 %v3386_v49 }
0x15f0   :  { %3391 = vrot.lane.b32.xlu1 %v5332_v56, %s4759_s8 }
0x15f1   :  { %3225 = vrot.lane.b32.xlu0 %v5332_v56, %s4758_s30 }
0x160a   :  { %v3132_v50 = vpop.f32.mrb[30].mxu1 }
0x160b   :  { %v3133_v51 = vadd.f32 %v3132_v50, %v3059_v31  ;;  %v4158_v52 = vpop.f32.mrb[31].mxu1  ;;  %v3507_v31 = vld [vmem:[#allocation23 + $0x10] sm:$0xff] }
0x160c   :  { %v4277_v36 = vpack.c.bf16 %v3508_v32, %v3507_v31  ;;  %v3609_v50 = vld [vmem:[%s5569_s20 + $0x50] sm:$0xff] }
0x160e   :  { %4278 = vmatprep.subr.bf16.mxu0 %v4277_v36 }
0x160f   :  { %4280 = vmatpush3.bf16.msra.mxu0 %v4277_v36 }
0x1614   :  { %3476 = vadd.xlane.f32.xlu1 %v3475_v55 }
0x1668   :  { %v3222_v57 = vpop.xlane.xlu0 %3221 }
0x1669   :  { %4401 = vrcp.f32 %v3222_v57 }
0x166c   :  { %v3388_v23 = vpop.xlane.xlu1 %3387  ;;  %v3226_v58 = vpop.permute.xlu0 %3225 }
0x166d   :  { %4403 = vrcp.f32 %v3388_v23  ;;  %4165 = vmatpush3.msra.mxu1 %v3226_v58 }
0x166e   :  { %4174 = vmatprep.subr.mxu1 %v4752_v20 }
0x1670   :  { %v3392_v56 = vpop.permute.xlu1 %3391 }
0x1673   :  { %v4402_v59 = vpop.eup %4401 }
0x1674   :  { %v3224_v61 = vmul.f32 %v4402_v59, %v4398_v46  ;;  %v4293_v46 = vpack.c.bf16 %v3606_v45, %v3605_v44 }
0x1676   :  { %4167 = vmatmul.mubr.msk.f32.vlgmr.msra.gmra.mrb[32].mxu1 %vm500_vm2, %v3224_v61 }
0x1677   :  { %v4404_v43 = vpop.eup %4403  ;;  %4175 = vmatpush3.msra.mxu1 %v3392_v56  ;;  %4176 = vmatprep.mubr.msk.f32.mxu1 %vm4753_vm1, %v4752_v20 }
0x1678   :  { %v3390_v4 = vmul.f32 %v4404_v43, %v4400_v48  ;;  %4282 = vmatprep.subr.bf16.mxu1 %v4281_v38  ;;  %v3608_v48 = vld [vmem:[%s5569_s20 + $0x48] sm:$0xff] }
0x1679   :  { %v4297_v49 = vpack.c.bf16 %v3608_v48, %v3607_v47 }
0x167a   :  { %4177 = vmatmul.mubr.msk.f32.vlgmr.msra.gmra.mrb[34].mxu1 %vm500_vm2, %v3390_v4  ;;  %v3613_v4 = vld [vmem:[%s5569_s20 + $0x70] sm:$0xff] }
0x167b   :  { %4284 = vmatpush3.bf16.msra.mxu1 %v4281_v38 }
0x167c   :  { %4286 = vmatprep.subr.bf16.mxu1 %v4285_v41 }
0x167f   :  { %4288 = vmatpush3.bf16.msra.mxu1 %v4285_v41 }
0x1680   :  { %4290 = vmatprep.subr.bf16.mxu1 %v4289_v5 }
0x1683   :  { %4292 = vmatpush3.bf16.msra.mxu1 %v4289_v5 }
0x1684   :  { %4294 = vmatprep.subr.bf16.mxu1 %v4293_v46 }
0x1687   :  { %4296 = vmatpush3.bf16.msra.mxu1 %v4293_v46 }
0x1688   :  { %4298 = vmatprep.subr.bf16.mxu1 %v4297_v49 }
0x168b   :  { %4300 = vmatpush3.bf16.msra.mxu1 %v4297_v49 }
0x16a1   :  { %v3477_v8 = vpop.xlane.xlu1 %3476 }
0x16a2   :  { %v3481_v9 = vmul.f32 0.03125, %v3477_v8 }
0x16a4   :  { %v3483_v10 = vsub.f32 %v3473_v54, %v3481_v9  ;;  %v3612_v54 = vld [vmem:[%s5569_s20 + $0x68] sm:$0xff] }
0x16a5   :  { %v4305_v55 = vpack.c.bf16 %v3612_v54, %v3611_v53 }
0x16a6   :  { %v3485_v39 = vmul.f32 %v3483_v10, %v3483_v10 }
0x16a8   :  { %v3487_v6 = vsel %vm245_vm0, %v3485_v39, 0.0 }
0x1749   :  { %v3297_v27 = vpop.f32.mrb[32].mxu1 }
0x174a   :  { %v3301_v62 = vadd.f32 %v3297_v27, %v3133_v51  ;;  %v4168_v63 = vpop.f32.mrb[33].mxu1  ;;  %v3610_v51 = vld [vmem:[%s5569_s20 + $0x58] sm:$0xff] }
0x174b   :  { %v4301_v52 = vpack.c.bf16 %v3610_v51, %v3609_v50  ;;  %v3614_v27 = vld [vmem:[%s5569_s20 + $0x78] sm:$0xff]  ;;  %v3825_v63 = vld [vmem:[%s5568_s19] ss:$0 sm:$0xff]  ;;  %s4760_s19 = smov [#allocation24]  }
0x174c   :  { %s3737_s20 = sshll.u32 %s4760_s19, 4  ;;  %s3738_s20 = int_to_ptr.vmem [resolvable:$true] %s3737_s20 }
0x174d   :  { %v3463_v0 = vpop.f32.mrb[34].mxu1  ;;  %4302 = vmatprep.subr.bf16.mxu1 %v4301_v52  ;;  %p4704_p7 = scmp.lt.s32.totalorder %s3738_s20, %s3738_s20 }
0x174e   :  { %v3467_v1 = vadd.f32 %v3463_v0, %v3301_v62  ;;  %v4178_v3 = vpop.f32.mrb[35].mxu1  ;;  %4304 = vmatpush3.bf16.msra.mxu1 %v4301_v52  ;;  %v4309_v62 = vpack.c.bf16 %v3614_v27, %v3613_v4 }
0x174f   :  { %4306 = vmatprep.subr.bf16.mxu1 %v4305_v55 }
0x1750   :  { %v3468_v7 = vadd.f32 %v5402_v60, %v3467_v1 }
0x1752   :  { %3470 = vst.msk [vmem:[#allocation2 + $0x8] sm:$0xff] %vm245_vm0, %v3468_v7  ;;  %4308 = vmatpush3.bf16.msra.mxu1 %v4305_v55 }
0x1753   :  { %4310 = vmatprep.subr.bf16.mxu1 %v4309_v62 }
0x1756   :  { %4312 = vmatpush3.bf16.msra.mxu1 %v4309_v62 }
0x1759   :  { %v3472_v11 = vld [vmem:[#allocation2 + $0x8] sm:$0xff] }
0x175a   :  { %v3474_v13 = vadd.f32 %v3472_v11, %v5291_v30 }
0x175c   :  { %v3478_v20 = vsel %vm245_vm0, %v3474_v13, 0.0 }
0x175d   :  { %3479 = vadd.xlane.f32.xlu0 %v3478_v20 }
0x1761   :  { %3488 = vadd.xlane.f32.xlu0 %v3487_v6 }
0x17ea   :  { %v3480_v14 = vpop.xlane.xlu0 %3479 }
0x17eb   :  { %v3482_v15 = vmul.f32 0.03125, %v3480_v14 }
0x17ed   :  { %v5454_v16 = vsub.f32 %v3474_v13, %v3482_v15 }
0x17ee   :  { %v3489_v60 = vpop.xlane.xlu0 %3488 }
0x17ef   :  { %v3493_v34 = vmul.f32 0.03125, %v3489_v60  ;;  %v3486_v17 = vmul.f32 %v5454_v16, %v5454_v16 }
0x17f1   :  { %v3495_v18 = vadd.f32 1e-05, %v3493_v34  ;;  %v3490_v19 = vsel %vm245_vm0, %v3486_v17, 0.0 }
0x17f2   :  { %3491 = vadd.xlane.f32.xlu1 %v3490_v19 }
0x17f3   :  { %4405 = vrsqrt.f32 %v3495_v18 }
0x17fd   :  { %v4406_v30 = vpop.eup %4405 }
0x17fe   :  { %v3499_v21 = vmul.f32 %v4406_v30, %v3483_v10  ;;  %v3828_v10 = vld [vmem:[%s5570_s21] ss:$0 sm:$0xff]  ;;  %s4699_s21 = scalar_lea.vmem %s3738_s20, 256 }
0x17ff   :  { %p4700_p6 = scmp.ne.s32.totalorder %s3738_s20, %s4699_s21  ;;  %p4705_p8 = scmp.lt.s32.totalorder %s4699_s21, %s4699_s21 }
0x1800   :  { %v3501_v22 = vmul.f32 %v5250_v12, %v3499_v21 }
0x1801   :  { %p4706_p9 = por %p4705_p8, %p4704_p7 }
0x1802   :  { %v5461_v25 = vadd.f32 %v5252_v2, %v3501_v22 }
0x1803   :  { %p4707_p10 = pnand %p4706_p9, %p4700_p6 }
0x1804   :  { %4187 = vmatprep.mubr.msk.f32.mxu0 %vm245_vm0, %v5461_v25 }
0x187f   :  { %v3492_v57 = vpop.xlane.xlu1 %3491 }
0x1880   :  { %v3494_v23 = vmul.f32 0.03125, %v3492_v57 }
0x1882   :  { %v3496_v58 = vadd.f32 1e-05, %v3494_v23 }
0x1884   :  { %4407 = vrsqrt.f32 %v3496_v58 }
0x188e   :  { %v4408_v59 = vpop.eup %4407 }
0x188f   :  { %v3500_v61 = vmul.f32 %v4408_v59, %v5454_v16 }
0x1891   :  { %v3502_v56 = vmul.f32 %v5250_v12, %v3500_v61 }
0x1893   :  { %v3504_v43 = vadd.f32 %v5252_v2, %v3502_v56 }
0x1895   :  { %4188 = vmatmul.mubr.msk.f32.vlgmr.msra.gmra.mrb[40].mxu0 %vm245_vm0, %v3504_v43 }
0x1968   :  { %v4189_v0 = vpop.f32.mrb[40].mxu0 }
0x1969   :  { %v3594_v1 = vadd.f32 %v4189_v0, %v3825_v63  ;;  %v3588_v3 = vpop.f32.mrb[41].mxu0 }
0x196a   :  { %v3589_v7 = vadd.f32 %v3825_v63, %v3588_v3 }
0x196b   :  { %v3598_v9 = vmax.f32 %v3594_v1, 0.0 }
0x196c   :  { %v3597_v8 = vmax.f32 %v3589_v7, 0.0 }
0x196e   :  { %4222 = vmatprep.mubr.f32.mxu1 %v3597_v8 }
0x196f   :  { %4223 = vmatmul.mubr.f32.vlgmr.msra.gmra.mrb[36].mxu1 %v3598_v9 }
0x1a42   :  { %v4224_v11 = vpop.f32.mrb[36].mxu1 }
0x1a43   :  { %v3694_v13 = vadd.f32 %v4224_v11, %v3828_v10  ;;  %v3688_v20 = vpop.f32.mrb[37].mxu1 }
0x1a44   :  { %v3689_v39 = vadd.f32 %v3828_v10, %v3688_v20 }
0x1a45   :  { %v3698_v6 = vadd.f32 %v3694_v13, %v3504_v43 }
0x1a46   :  { %v3697_v14 = vadd.f32 %v3689_v39, %v5461_v25 }
0x1a47   :  { %v3702_v15 = vsel %vm245_vm0, %v3698_v6, 0.0 }
0x1a48   :  { %3703 = vadd.xlane.f32.xlu1 %v3702_v15  ;;  %v3699_v16 = vsel %vm245_vm0, %v3697_v14, 0.0 }
0x1a49   :  { %3700 = vadd.xlane.f32.xlu0 %v3699_v16 }
0x1ad5   :  { %v3704_v60 = vpop.xlane.xlu1 %3703 }
0x1ad6   :  { %v3706_v34 = vmul.f32 0.03125, %v3704_v60  ;;  %v3701_v17 = vpop.xlane.xlu0 %3700 }
0x1ad7   :  { %v3705_v18 = vmul.f32 0.03125, %v3701_v17 }
0x1ad8   :  { %v3708_v19 = vsub.f32 %v3698_v6, %v3706_v34 }
0x1ad9   :  { %v3707_v30 = vsub.f32 %v3697_v14, %v3705_v18 }
0x1ada   :  { %v3710_v21 = vmul.f32 %v3708_v19, %v3708_v19 }
0x1adb   :  { %v3709_v22 = vmul.f32 %v3707_v30, %v3707_v30 }
0x1adc   :  { %v3714_v26 = vsel %vm245_vm0, %v3710_v21, 0.0 }
0x1add   :  { %3715 = vadd.xlane.f32.xlu1 %v3714_v26  ;;  %v3711_v28 = vsel %vm245_vm0, %v3709_v22, 0.0 }
0x1ade   :  { %3712 = vadd.xlane.f32.xlu0 %v3711_v28 }
0x1b6a   :  { %v3716_v25 = vpop.xlane.xlu1 %3715 }
0x1b6b   :  { %v3718_v29 = vmul.f32 0.03125, %v3716_v25  ;;  %v3713_v31 = vpop.xlane.xlu0 %3712 }
0x1b6c   :  { %v3717_v32 = vmul.f32 0.03125, %v3713_v31 }
0x1b6d   :  { %v3720_v36 = vadd.f32 1e-05, %v3718_v29 }
0x1b6e   :  { %v3719_v35 = vadd.f32 1e-05, %v3717_v32 }
0x1b6f   :  { %4409 = vrsqrt.f32 %v3720_v36 }
0x1b70   :  { %4411 = vrsqrt.f32 %v3719_v35 }
0x1b79   :  { %v4410_v24 = vpop.eup %4409 }
0x1b7a   :  { %v4412_v37 = vpop.eup %4411  ;;  %v3724_v38 = vmul.f32 %v4410_v24, %v3708_v19 }
0x1b7b   :  { %v3723_v40 = vmul.f32 %v4412_v37, %v3707_v30 }
0x1b7c   :  { %v3726_v41 = vmul.f32 %v5250_v12, %v3724_v38 }
0x1b7d   :  { %v3725_v33 = vmul.f32 %v5250_v12, %v3723_v40 }
0x1b7e   :  { %v3728_v42 = vadd.f32 %v5252_v2, %v3726_v41 }
0x1b7f   :  { %v3727_v5 = vadd.f32 %v5252_v2, %v3725_v33 }
0x1b80   :  { %3731 = vst.msk [vmem:[#allocation24 + $0x8] sm:$0xff] %vm245_vm0, %v3728_v42 }
0x1b81   :  { %3729 = vst.msk [vmem:[#allocation24] sm:$0xff] %vm245_vm0, %v3727_v5 }
0x1b82   :  { %4710 = shalt.err (!%p4707_p10)
}
0x1b83   :  { %s4711_s17 = scalar_lea.hbm %s5571_s22, 256 }
0x1b84   :  { %p4712_p11 = scmp.ne.s32.totalorder %s5571_s22, %s4711_s17  ;;  %p4715_p12 = scmp.lt.u32.totalorder %s4711_s17, %s5571_s22 }
0x1b86   :  { %p4717_p13 = pnand %p4715_p12, %p4712_p11 }
0x1b88   :  { %4720 = shalt.err (!%p4717_p13)
}
0x1b89   :  { %3743 = dma.vmem_to_hbm [thread:$0]  %s3738_s20, 256, %s5571_s22, [#allocation5], %s5594_s5, %s5594_s5, %s5593_s29  }
0x1b8a   :  { %4735 = dma.done.wait [#allocation5], 256  }
0x1b8b   :  { %4736 = vsyncadd [#allocation5], 4294967040 }
0x1b8c   :  { %3747 = vsyncpa [#allocation4], 1 }
0x1b8d   :  { %3748 = vsyncpa [#allocation7], 1 }
0x1b8e   :  { %3749 = vsyncpa [#allocation10], 1 }
0x1b8f   :  { %3750 = vsyncpa [#allocation13], 1 }
0x1b90   :  { %3751 = vsyncpa [#allocation16], 1 }
0x1b91   :  { %3752 = vsyncpa [#allocation19], 1 }
0x1b92   :  { %3753 = vsyncpa [#allocation22], 1 }
0x1b93   :  { %3754 = vsyncpa [#allocation5], 1 }

</bundles_post_ra>
